<compile_context>
chip_gen: v6e
topology: v6e:2x2x1
jax: 0.10.0
libtpu: 0.0.40
codegen_flags: <defaults>
</compile_context>

<pallas_src>
import functools
import math

import jax
import jax.numpy as jnp
from jax.experimental import pallas as pl
from jax.experimental.pallas import tpu as pltpu


# ----------------------------- kernels ------------------------------------- #

def upsample_conv_kernel(x_ref, w_ref, b_ref, o_ref, xs_ref, *, H, W):
    """Fused nearest-2x upsample + 3x3 conv (pad=1), one batch element per step.

    x_ref  : (1, H*W, C)          low-res input, flattened rows, bf16
    w_ref  : (2, 2, 2, 2C, C)     folded per-phase weights [r, s, row-tap a], bf16
    b_ref  : (1, C)               conv bias, f32
    o_ref  : (1, 2, 2, H*W, C)    phase outputs y[n, 2i+r, 2j+s, :], f32
    xs_ref : ((H+2)*W, 3C)        bf16 scratch: H-padded, channel-interleaved
                                  column shifts [x[:,j-1] | x[:,j] | x[:,j+1]]
    """
    HW = H * W
    C = x_ref.shape[-1]
    Cout = o_ref.shape[-1]

    # ---- column-shifted slabs: built ONCE per batch step (r-independent) ---- #
    x_bf = x_ref[0]                                    # (HW, C) bf16
    x32 = x_bf.astype(jnp.float32)                     # f32 shift/mask math (v5e-safe)
    colj = jax.lax.broadcasted_iota(jnp.int32, (HW, 1), 0) % W
    left_ok = (colj >= 1).astype(jnp.float32)          # column j-1 exists
    right_ok = (colj <= W - 2).astype(jnp.float32)     # column j+1 exists
    # Roll along the flattened row axis: the wrapped rows are exactly the
    # out-of-image columns and are zeroed by the 0/1 mask multiply.
    xm1 = pltpu.roll(x32, shift=1, axis=0) * left_ok        # x[:, j-1]
    xp1 = pltpu.roll(x32, shift=HW - 1, axis=0) * right_ok  # x[:, j+1]

    # H-padded slab: one zero row above and below; channel-interleaved so the
    # two column taps of a phase s are ONE contiguous lane slice [s*C:(s+2)*C].
    zrow = jnp.zeros((W, 3 * C), xs_ref.dtype)
    xs_ref[pl.ds(0, W), :] = zrow                          # padded row -1
    xs_ref[pl.ds((H + 1) * W, W), :] = zrow                # padded row  H
    xs_ref[pl.ds(W, HW), pl.ds(0, C)] = xm1.astype(xs_ref.dtype)
    xs_ref[pl.ds(W, HW), pl.ds(C, C)] = x_bf
    xs_ref[pl.ds(W, HW), pl.ds(2 * C, C)] = xp1.astype(xs_ref.dtype)

    # Hoisted bias broadcast (JAX does not CSE broadcast_in_dim inside loops).
    bias = jnp.broadcast_to(b_ref[...], (HW, Cout))        # f32

    # ---- 4 phases: each is two (HW,2C)x(2C,C) MXU matmuls, no concat copy --- #
    for r in range(2):                 # output-row phase (static)
        for s in range(2):             # output-col phase (static)
            lhs_top = xs_ref[pl.ds(r * W, HW), pl.ds(s * C, 2 * C)]        # dh=r-1
            lhs_bot = xs_ref[pl.ds((r + 1) * W, HW), pl.ds(s * C, 2 * C)]  # dh=r
            acc = jnp.dot(lhs_top, w_ref[r, s, 0],
                          preferred_element_type=jnp.float32)
            acc = acc + jnp.dot(lhs_bot, w_ref[r, s, 1],
                                preferred_element_type=jnp.float32)
            o_ref[0, r, s] = (acc + bias).astype(o_ref.dtype)


def upsample_nearest_kernel(x_ref, o_ref):
    """Nearest 2x upsample only (with_conv=False): lane-dense copy, 4 phases/step.

    x_ref : (1, H, W*C)        o_ref : (1, 2, 2, H, W*C)   (input dtype preserved)
    """
    xv = x_ref[0]
    for r in range(2):
        for s in range(2):
            o_ref[0, r, s] = xv


# --------------------------- parameter helpers ------------------------------ #

def _fold_phase_weights(w_hwio):
    """Fold 3x3 HWIO conv weights into per-(phase, row-tap) (2*Cin, Cout) slabs.

    For output pixel (2i+r, 2j+s), tap (kh, kw) reads low-res pixel
    (i + (r+kh-1)//2, j + (s+kw-1)//2); taps mapping to the same low-res shift
    are summed.  Returned layout is [r, s, a, b*Cin + cin, cout] with row-tap
    a in {0,1} (dh = r-1+a) and column-tap b in {0,1} (dw = s-1+b) — matching
    the kernel's channel-interleaved scratch slice order.
    Returns (2, 2, 2, 2*Cin, Cout).
    """
    _, _, cin, cout = w_hwio.shape
    wp = jnp.zeros((2, 2, 2, 2, cin, cout), w_hwio.dtype)
    for r in range(2):
        for s in range(2):
            for kh in range(3):
                for kw in range(3):
                    a = (r + kh - 1) // 2 - (r - 1)   # in {0, 1}
                    b = (s + kw - 1) // 2 - (s - 1)   # in {0, 1}
                    wp = wp.at[r, s, a, b].add(w_hwio[kh, kw])
    # (2,2,2,2,cin,cout) -> (2,2,2, 2*cin, cout) with column-tap b as the outer
    # Cin block (b=0 first), matching lanes [s*C:(s+2)*C] of the scratch.
    return jnp.concatenate([wp[:, :, :, 0], wp[:, :, :, 1]], axis=3)


# ------------------------------- module ------------------------------------- #

class UpsamplePallas:
    """Pallas equivalent of models/LSTM.py::Upsample (forward only)."""

    def __init__(self, in_channels, with_conv, key):
        self.with_conv = with_conv
        self.in_channels = in_channels
        if with_conv:
            k_w, k_b = jax.random.split(key)
            fan_in = in_channels * 3 * 3
            bound = 1.0 / math.sqrt(fan_in)
            # torch Conv2d weight layout is (Cout, Cin, 3, 3); store HWIO.
            w_oihw = jax.random.uniform(
                k_w, (in_channels, in_channels, 3, 3), jnp.float32,
                minval=-bound, maxval=bound)
            self.w_hwio = jnp.transpose(w_oihw, (2, 3, 1, 0))
            self.b = jax.random.uniform(
                k_b, (in_channels,), jnp.float32, minval=-bound, maxval=bound)
            # bf16 matmul operands, f32 accumulation in-kernel.
            self.wfold = _fold_phase_weights(self.w_hwio).astype(jnp.bfloat16)
            self.b2d = self.b.reshape(1, in_channels)

    def __call__(self, x_nchw):
        N, C, H, W = x_nchw.shape
        # NCHW (PyTorch) -> NHWC for the kernel.
        x = jnp.transpose(x_nchw, (0, 2, 3, 1))

        cparams = pltpu.CompilerParams(
            dimension_semantics=("parallel",),
            vmem_limit_bytes=64 * 1024 * 1024)

        if self.with_conv:
            # bf16 over HBM: slabs are bf16 before the matmul anyway, so the
            # result is bit-identical to casting inside the kernel.
            xb = x.reshape(N, H * W, C).astype(jnp.bfloat16)
            kernel = functools.partial(upsample_conv_kernel, H=H, W=W)
            phases = pl.pallas_call(
                kernel,
                out_shape=jax.ShapeDtypeStruct((N, 2, 2, H * W, C), jnp.float32),
                grid=(N,),
                in_specs=[
                    pl.BlockSpec((1, H * W, C), lambda n: (n, 0, 0)),
                    pl.BlockSpec((2, 2, 2, 2 * C, C),
                                 lambda n: (0, 0, 0, 0, 0)),
                    pl.BlockSpec((1, C), lambda n: (0, 0)),
                ],
                out_specs=pl.BlockSpec((1, 2, 2, H * W, C),
                                       lambda n: (n, 0, 0, 0, 0)),
                scratch_shapes=[
                    pltpu.VMEM(((H + 2) * W, 3 * C), jnp.bfloat16)],
                compiler_params=cparams,
            )(xb, self.wfold, self.b2d)
            phases = phases.reshape(N, 2, 2, H, W, C)
        else:
            # dtype-preserving pure copy per phase (PyTorch preserves dtype);
            # trailing dims pre-flattened to W*C -> lane-dense stores, one grid
            # step per batch element writes all 4 phases.
            xf = x.reshape(N, H, W * C)
            phases = pl.pallas_call(
                upsample_nearest_kernel,
                out_shape=jax.ShapeDtypeStruct((N, 2, 2, H, W * C), x.dtype),
                grid=(N,),
                in_specs=[pl.BlockSpec((1, H, W * C), lambda n: (n, 0, 0))],
                out_specs=pl.BlockSpec((1, 2, 2, H, W * C),
                                       lambda n: (n, 0, 0, 0, 0)),
                compiler_params=cparams,
            )(xf)
            phases = phases.reshape(N, 2, 2, H, W, C)

        # (N, r, s, H, W, C) -> (N, C, H, r, W, s) -> (N, C, 2H, 2W):
        # a single fused XLA permutation (phase interleave + NHWC->NCHW).
        return phases.transpose(0, 5, 3, 1, 4, 2).reshape(N, C, 2 * H, 2 * W)


# ------------------------------ reference ----------------------------------- #

def ref_forward_nchw(x_nchw, w_hwio, bias, with_conv):
    x = jnp.transpose(x_nchw, (0, 2, 3, 1))
    y = jnp.repeat(jnp.repeat(x, 2, axis=1), 2, axis=2)   # nearest 2x
    if with_conv:
        y = jax.lax.conv_general_dilated(
            y.astype(jnp.float32), w_hwio, window_strides=(1, 1),
            padding="SAME", dimension_numbers=("NHWC", "HWIO", "NHWC"),
            precision=jax.lax.Precision.HIGHEST)
        y = y + bias[None, None, None, :]
    return jnp.transpose(y, (0, 3, 1, 2))


# -------------------------------- main -------------------------------------- #

if __name__ == "__main__":
    key = jax.random.PRNGKey(0)
    k_x, k_p = jax.random.split(key)

    N, C, H, W = 2, 4, 16, 16
    x = jax.random.normal(k_x, (N, C, H, W), jnp.float32)

    # with_conv=True path (fused upsample + 3x3 conv)
    mod = UpsamplePallas(C, with_conv=True, key=k_p)
    y = jax.block_until_ready(mod(x))
    assert y.shape == (N, C, 2 * H, 2 * W), y.shape
    y_ref = ref_forward_nchw(x, mod.w_hwio, mod.b, True)
    # bf16 matmul operands with f32 accumulation -> documented loose tolerance.
    err = float(jnp.max(jnp.abs(y - y_ref)))
    assert jnp.allclose(y, y_ref, rtol=5e-2, atol=5e-2), err

    # with_conv=False path (pure nearest upsample), f32
    mod2 = UpsamplePallas(C, with_conv=False, key=k_p)
    y2 = jax.block_until_ready(mod2(x))
    y2_ref = ref_forward_nchw(x, None, None, False)
    assert y2.shape == (N, C, 2 * H, 2 * W), y2.shape
    assert jnp.allclose(y2, y2_ref), float(jnp.max(jnp.abs(y2 - y2_ref)))

    # with_conv=False preserves input dtype (bf16 in -> bf16 out, exact copy)
    xb = x.astype(jnp.bfloat16)
    y3 = jax.block_until_ready(mod2(xb))
    assert y3.dtype == jnp.bfloat16, y3.dtype
    y3_ref = ref_forward_nchw(xb, None, None, False)
    assert jnp.array_equal(y3, y3_ref)

    print("KERNEL_OK")
</pallas_src>

<mosaic_0001>
module attributes {stable_mosaic.version = 11 : i64} {
  func.func @upsample_conv_kernel(%arg0: i32, %arg1: memref<1x256x4xbf16, #tpu.memory_space<vmem>>, %arg2: memref<2x2x2x8x4xbf16, #tpu.memory_space<vmem>>, %arg3: memref<1x4xf32, #tpu.memory_space<vmem>>, %arg4: memref<1x2x2x256x4xf32, #tpu.memory_space<vmem>>, %arg5: memref<288x12xbf16, #tpu.memory_space<vmem>>) attributes {dimension_semantics = [#tpu.dimension_semantics<parallel>], iteration_bounds = array<i64: 2>, scalar_prefetch = 0 : i64, scratch_operands = 1 : i64, tpu.core_type = #tpu.core_type<tc>, window_params = [{transform_indices = @transform_0, window_bounds = array<i64: 1, 256, 4>}, {pipeline_mode = #tpu.pipeline_mode<synchronous>, transform_indices = @transform_1, window_bounds = array<i64: 2, 2, 2, 8, 4>}, {pipeline_mode = #tpu.pipeline_mode<synchronous>, transform_indices = @transform_2, window_bounds = array<i64: 1, 4>}, {transform_indices = @transform_3, window_bounds = array<i64: 1, 2, 2, 256, 4>}]} {
    %c0 = arith.constant 0 : index
    %c0_0 = arith.constant 0 : index
    %c0_1 = arith.constant 0 : index
    %0 = vector.load %arg1[%c0, %c0_0, %c0_1] : memref<1x256x4xbf16, #tpu.memory_space<vmem>>, vector<1x256x4xbf16>
    %1 = vector.shape_cast %0 : vector<1x256x4xbf16> to vector<256x4xbf16>
    %2 = arith.extf %1 : vector<256x4xbf16> to vector<256x4xf32>
    %3 = tpu.iota {dimensions = array<i32: 0>} : vector<256x1xi32>
    %c16_i32 = arith.constant 16 : i32
    %c0_i32 = arith.constant 0 : i32
    %4 = arith.cmpi eq, %c16_i32, %c0_i32 : i32
    %c1_i32 = arith.constant 1 : i32
    %5 = arith.select %4, %c1_i32, %c16_i32 : i32
    %6 = vector.broadcast %5 : i32 to vector<256x1xi32>
    %7 = arith.remsi %3, %6 : vector<256x1xi32>
    %c0_i32_2 = arith.constant 0 : i32
    %8 = vector.broadcast %c0_i32_2 : i32 to vector<256x1xi32>
    %9 = arith.cmpi ne, %7, %8 : vector<256x1xi32>
    %c0_i32_3 = arith.constant 0 : i32
    %10 = vector.broadcast %c0_i32_3 : i32 to vector<256x1xi32>
    %11 = arith.cmpi slt, %7, %10 : vector<256x1xi32>
    %c0_i32_4 = arith.constant 0 : i32
    %12 = arith.cmpi slt, %5, %c0_i32_4 : i32
    %13 = vector.broadcast %12 : i1 to vector<256x1xi1>
    %14 = vector.broadcast %13 : vector<256x1xi1> to vector<256x1xi1>
    %15 = arith.xori %11, %14 : vector<256x1xi1>
    %16 = arith.andi %15, %9 : vector<256x1xi1>
    %17 = vector.broadcast %5 : i32 to vector<256x1xi32>
    %18 = arith.addi %7, %17 : vector<256x1xi32>
    %19 = arith.select %16, %18, %7 : vector<256x1xi1>, vector<256x1xi32>
    %c1_i32_5 = arith.constant 1 : i32
    %20 = vector.broadcast %c1_i32_5 : i32 to vector<256x1xi32>
    %21 = arith.cmpi sge, %19, %20 : vector<256x1xi32>
    %22 = arith.extui %21 : vector<256x1xi1> to vector<256x1xi32>
    %23 = arith.sitofp %22 : vector<256x1xi32> to vector<256x1xf32>
    %c14_i32 = arith.constant 14 : i32
    %24 = vector.broadcast %c14_i32 : i32 to vector<256x1xi32>
    %25 = arith.cmpi sle, %19, %24 : vector<256x1xi32>
    %26 = arith.extui %25 : vector<256x1xi1> to vector<256x1xi32>
    %27 = arith.sitofp %26 : vector<256x1xi32> to vector<256x1xf32>
    %c1_i32_6 = arith.constant 1 : i32
    %28 = tpu.dynamic_rotate %2 by %c1_i32_6 dim 0 : vector<256x4xf32>, i32 -> vector<256x4xf32>
    %29 = vector.broadcast %23 : vector<256x1xf32> to vector<256x4xf32>
    %30 = arith.mulf %28, %29 : vector<256x4xf32>
    %c255_i32 = arith.constant 255 : i32
    %31 = tpu.dynamic_rotate %2 by %c255_i32 dim 0 : vector<256x4xf32>, i32 -> vector<256x4xf32>
    %32 = vector.broadcast %27 : vector<256x1xf32> to vector<256x4xf32>
    %33 = arith.mulf %31, %32 : vector<256x4xf32>
    %cst = arith.constant 0.000000e+00 : bf16
    %34 = vector.broadcast %cst : bf16 to vector<16x12xbf16>
    %c0_7 = arith.constant 0 : index
    %c0_8 = arith.constant 0 : index
    %35 = vector.load %arg5[%c0_7, %c0_8] : memref<288x12xbf16, #tpu.memory_space<vmem>>, vector<16x12xbf16>
    tpu.vector_store %arg5[%c0_7, %c0_8], %34 {strides = array<i32>} : memref<288x12xbf16, #tpu.memory_space<vmem>>, vector<16x12xbf16>,
    %c272 = arith.constant 272 : index
    %c0_9 = arith.constant 0 : index
    %36 = vector.load %arg5[%c272, %c0_9] : memref<288x12xbf16, #tpu.memory_space<vmem>>, vector<16x12xbf16>
    tpu.vector_store %arg5[%c272, %c0_9], %34 {strides = array<i32>} : memref<288x12xbf16, #tpu.memory_space<vmem>>, vector<16x12xbf16>,
    %37 = arith.truncf %30 : vector<256x4xf32> to vector<256x4xbf16>
    %c16 = arith.constant 16 : index
    %c0_10 = arith.constant 0 : index
    %38 = vector.load %arg5[%c16, %c0_10] : memref<288x12xbf16, #tpu.memory_space<vmem>>, vector<256x4xbf16>
    tpu.vector_store %arg5[%c16, %c0_10], %37 {strides = array<i32>} : memref<288x12xbf16, #tpu.memory_space<vmem>>, vector<256x4xbf16>,
    %c16_11 = arith.constant 16 : index
    %c4 = arith.constant 4 : index
    %39 = vector.load %arg5[%c16_11, %c4] : memref<288x12xbf16, #tpu.memory_space<vmem>>, vector<256x4xbf16>
    tpu.vector_store %arg5[%c16_11, %c4], %1 {strides = array<i32>} : memref<288x12xbf16, #tpu.memory_space<vmem>>, vector<256x4xbf16>,
    %40 = arith.truncf %33 : vector<256x4xf32> to vector<256x4xbf16>
    %c16_12 = arith.constant 16 : index
    %c8 = arith.constant 8 : index
    %41 = vector.load %arg5[%c16_12, %c8] : memref<288x12xbf16, #tpu.memory_space<vmem>>, vector<256x4xbf16>
    tpu.vector_store %arg5[%c16_12, %c8], %40 {strides = array<i32>} : memref<288x12xbf16, #tpu.memory_space<vmem>>, vector<256x4xbf16>,
    %c0_13 = arith.constant 0 : index
    %c0_14 = arith.constant 0 : index
    %42 = vector.load %arg3[%c0_13, %c0_14] : memref<1x4xf32, #tpu.memory_space<vmem>>, vector<1x4xf32>
    %43 = vector.shape_cast %42 : vector<1x4xf32> to vector<1x4xf32>
    %44 = vector.broadcast %43 : vector<1x4xf32> to vector<256x4xf32>
    %c0_15 = arith.constant 0 : index
    %c0_16 = arith.constant 0 : index
    %45 = vector.load %arg5[%c0_15, %c0_16] : memref<288x12xbf16, #tpu.memory_space<vmem>>, vector<256x8xbf16>
    %c16_17 = arith.constant 16 : index
    %c0_18 = arith.constant 0 : index
    %46 = vector.load %arg5[%c16_17, %c0_18] : memref<288x12xbf16, #tpu.memory_space<vmem>>, vector<256x8xbf16>
    %c0_19 = arith.constant 0 : index
    %c0_20 = arith.constant 0 : index
    %c0_21 = arith.constant 0 : index
    %c0_22 = arith.constant 0 : index
    %c0_23 = arith.constant 0 : index
    %47 = vector.load %arg2[%c0_19, %c0_20, %c0_21, %c0_22, %c0_23] : memref<2x2x2x8x4xbf16, #tpu.memory_space<vmem>>, vector<1x1x1x8x4xbf16>
    %48 = vector.shape_cast %47 : vector<1x1x1x8x4xbf16> to vector<8x4xbf16>
    %cst_24 = arith.constant dense<0.000000e+00> : vector<256x4xf32>
    %49 = tpu.matmul %45, %48, %cst_24 {dimension_numbers = #tpu.dot_dimension_numbers<[1], [0], [0], [1], [0, 0, 1, 1], [], []>} : vector<256x8xbf16>, vector<8x4xbf16>, vector<256x4xf32> -> vector<256x4xf32>
    %c0_25 = arith.constant 0 : index
    %c0_26 = arith.constant 0 : index
    %c1 = arith.constant 1 : index
    %c0_27 = arith.constant 0 : index
    %c0_28 = arith.constant 0 : index
    %50 = vector.load %arg2[%c0_25, %c0_26, %c1, %c0_27, %c0_28] : memref<2x2x2x8x4xbf16, #tpu.memory_space<vmem>>, vector<1x1x1x8x4xbf16>
    %51 = vector.shape_cast %50 : vector<1x1x1x8x4xbf16> to vector<8x4xbf16>
    %cst_29 = arith.constant dense<0.000000e+00> : vector<256x4xf32>
    %52 = tpu.matmul %46, %51, %cst_29 {dimension_numbers = #tpu.dot_dimension_numbers<[1], [0], [0], [1], [0, 0, 1, 1], [], []>} : vector<256x8xbf16>, vector<8x4xbf16>, vector<256x4xf32> -> vector<256x4xf32>
    %53 = arith.addf %49, %52 : vector<256x4xf32>
    %54 = arith.addf %53, %44 : vector<256x4xf32>
    %c0_30 = arith.constant 0 : index
    %c0_31 = arith.constant 0 : index
    %c0_32 = arith.constant 0 : index
    %c0_33 = arith.constant 0 : index
    %c0_34 = arith.constant 0 : index
    %55 = vector.load %arg4[%c0_30, %c0_31, %c0_32, %c0_33, %c0_34] : memref<1x2x2x256x4xf32, #tpu.memory_space<vmem>>, vector<1x1x1x256x4xf32>
    %56 = vector.shape_cast %55 : vector<1x1x1x256x4xf32> to vector<256x4xf32>
    %57 = vector.shape_cast %54 : vector<256x4xf32> to vector<1x1x1x256x4xf32>
    tpu.vector_store %arg4[%c0_30, %c0_31, %c0_32, %c0_33, %c0_34], %57 {strides = array<i32>} : memref<1x2x2x256x4xf32, #tpu.memory_space<vmem>>, vector<1x1x1x256x4xf32>,
    %c0_35 = arith.constant 0 : index
    %c4_36 = arith.constant 4 : index
    %58 = vector.load %arg5[%c0_35, %c4_36] : memref<288x12xbf16, #tpu.memory_space<vmem>>, vector<256x8xbf16>
    %c16_37 = arith.constant 16 : index
    %c4_38 = arith.constant 4 : index
    %59 = vector.load %arg5[%c16_37, %c4_38] : memref<288x12xbf16, #tpu.memory_space<vmem>>, vector<256x8xbf16>
    %c0_39 = arith.constant 0 : index
    %c1_40 = arith.constant 1 : index
    %c0_41 = arith.constant 0 : index
    %c0_42 = arith.constant 0 : index
    %c0_43 = arith.constant 0 : index
    %60 = vector.load %arg2[%c0_39, %c1_40, %c0_41, %c0_42, %c0_43] : memref<2x2x2x8x4xbf16, #tpu.memory_space<vmem>>, vector<1x1x1x8x4xbf16>
    %61 = vector.shape_cast %60 : vector<1x1x1x8x4xbf16> to vector<8x4xbf16>
    %cst_44 = arith.constant dense<0.000000e+00> : vector<256x4xf32>
    %62 = tpu.matmul %58, %61, %cst_44 {dimension_numbers = #tpu.dot_dimension_numbers<[1], [0], [0], [1], [0, 0, 1, 1], [], []>} : vector<256x8xbf16>, vector<8x4xbf16>, vector<256x4xf32> -> vector<256x4xf32>
    %c0_45 = arith.constant 0 : index
    %c1_46 = arith.constant 1 : index
    %c1_47 = arith.constant 1 : index
    %c0_48 = arith.constant 0 : index
    %c0_49 = arith.constant 0 : index
    %63 = vector.load %arg2[%c0_45, %c1_46, %c1_47, %c0_48, %c0_49] : memref<2x2x2x8x4xbf16, #tpu.memory_space<vmem>>, vector<1x1x1x8x4xbf16>
    %64 = vector.shape_cast %63 : vector<1x1x1x8x4xbf16> to vector<8x4xbf16>
    %cst_50 = arith.constant dense<0.000000e+00> : vector<256x4xf32>
    %65 = tpu.matmul %59, %64, %cst_50 {dimension_numbers = #tpu.dot_dimension_numbers<[1], [0], [0], [1], [0, 0, 1, 1], [], []>} : vector<256x8xbf16>, vector<8x4xbf16>, vector<256x4xf32> -> vector<256x4xf32>
    %66 = arith.addf %62, %65 : vector<256x4xf32>
    %67 = arith.addf %66, %44 : vector<256x4xf32>
    %c0_51 = arith.constant 0 : index
    %c0_52 = arith.constant 0 : index
    %c1_53 = arith.constant 1 : index
    %c0_54 = arith.constant 0 : index
    %c0_55 = arith.constant 0 : index
    %68 = vector.load %arg4[%c0_51, %c0_52, %c1_53, %c0_54, %c0_55] : memref<1x2x2x256x4xf32, #tpu.memory_space<vmem>>, vector<1x1x1x256x4xf32>
    %69 = vector.shape_cast %68 : vector<1x1x1x256x4xf32> to vector<256x4xf32>
    %70 = vector.shape_cast %67 : vector<256x4xf32> to vector<1x1x1x256x4xf32>
    tpu.vector_store %arg4[%c0_51, %c0_52, %c1_53, %c0_54, %c0_55], %70 {strides = array<i32>} : memref<1x2x2x256x4xf32, #tpu.memory_space<vmem>>, vector<1x1x1x256x4xf32>,
    %c16_56 = arith.constant 16 : index
    %c0_57 = arith.constant 0 : index
    %71 = vector.load %arg5[%c16_56, %c0_57] : memref<288x12xbf16, #tpu.memory_space<vmem>>, vector<256x8xbf16>
    %c32 = arith.constant 32 : index
    %c0_58 = arith.constant 0 : index
    %72 = vector.load %arg5[%c32, %c0_58] : memref<288x12xbf16, #tpu.memory_space<vmem>>, vector<256x8xbf16>
    %c1_59 = arith.constant 1 : index
    %c0_60 = arith.constant 0 : index
    %c0_61 = arith.constant 0 : index
    %c0_62 = arith.constant 0 : index
    %c0_63 = arith.constant 0 : index
    %73 = vector.load %arg2[%c1_59, %c0_60, %c0_61, %c0_62, %c0_63] : memref<2x2x2x8x4xbf16, #tpu.memory_space<vmem>>, vector<1x1x1x8x4xbf16>
    %74 = vector.shape_cast %73 : vector<1x1x1x8x4xbf16> to vector<8x4xbf16>
    %cst_64 = arith.constant dense<0.000000e+00> : vector<256x4xf32>
    %75 = tpu.matmul %71, %74, %cst_64 {dimension_numbers = #tpu.dot_dimension_numbers<[1], [0], [0], [1], [0, 0, 1, 1], [], []>} : vector<256x8xbf16>, vector<8x4xbf16>, vector<256x4xf32> -> vector<256x4xf32>
    %c1_65 = arith.constant 1 : index
    %c0_66 = arith.constant 0 : index
    %c1_67 = arith.constant 1 : index
    %c0_68 = arith.constant 0 : index
    %c0_69 = arith.constant 0 : index
    %76 = vector.load %arg2[%c1_65, %c0_66, %c1_67, %c0_68, %c0_69] : memref<2x2x2x8x4xbf16, #tpu.memory_space<vmem>>, vector<1x1x1x8x4xbf16>
    %77 = vector.shape_cast %76 : vector<1x1x1x8x4xbf16> to vector<8x4xbf16>
    %cst_70 = arith.constant dense<0.000000e+00> : vector<256x4xf32>
    %78 = tpu.matmul %72, %77, %cst_70 {dimension_numbers = #tpu.dot_dimension_numbers<[1], [0], [0], [1], [0, 0, 1, 1], [], []>} : vector<256x8xbf16>, vector<8x4xbf16>, vector<256x4xf32> -> vector<256x4xf32>
    %79 = arith.addf %75, %78 : vector<256x4xf32>
    %80 = arith.addf %79, %44 : vector<256x4xf32>
    %c0_71 = arith.constant 0 : index
    %c1_72 = arith.constant 1 : index
    %c0_73 = arith.constant 0 : index
    %c0_74 = arith.constant 0 : index
    %c0_75 = arith.constant 0 : index
    %81 = vector.load %arg4[%c0_71, %c1_72, %c0_73, %c0_74, %c0_75] : memref<1x2x2x256x4xf32, #tpu.memory_space<vmem>>, vector<1x1x1x256x4xf32>
    %82 = vector.shape_cast %81 : vector<1x1x1x256x4xf32> to vector<256x4xf32>
    %83 = vector.shape_cast %80 : vector<256x4xf32> to vector<1x1x1x256x4xf32>
    tpu.vector_store %arg4[%c0_71, %c1_72, %c0_73, %c0_74, %c0_75], %83 {strides = array<i32>} : memref<1x2x2x256x4xf32, #tpu.memory_space<vmem>>, vector<1x1x1x256x4xf32>,
    %c16_76 = arith.constant 16 : index
    %c4_77 = arith.constant 4 : index
    %84 = vector.load %arg5[%c16_76, %c4_77] : memref<288x12xbf16, #tpu.memory_space<vmem>>, vector<256x8xbf16>
    %c32_78 = arith.constant 32 : index
    %c4_79 = arith.constant 4 : index
    %85 = vector.load %arg5[%c32_78, %c4_79] : memref<288x12xbf16, #tpu.memory_space<vmem>>, vector<256x8xbf16>
    %c1_80 = arith.constant 1 : index
    %c1_81 = arith.constant 1 : index
    %c0_82 = arith.constant 0 : index
    %c0_83 = arith.constant 0 : index
    %c0_84 = arith.constant 0 : index
    %86 = vector.load %arg2[%c1_80, %c1_81, %c0_82, %c0_83, %c0_84] : memref<2x2x2x8x4xbf16, #tpu.memory_space<vmem>>, vector<1x1x1x8x4xbf16>
    %87 = vector.shape_cast %86 : vector<1x1x1x8x4xbf16> to vector<8x4xbf16>
    %cst_85 = arith.constant dense<0.000000e+00> : vector<256x4xf32>
    %88 = tpu.matmul %84, %87, %cst_85 {dimension_numbers = #tpu.dot_dimension_numbers<[1], [0], [0], [1], [0, 0, 1, 1], [], []>} : vector<256x8xbf16>, vector<8x4xbf16>, vector<256x4xf32> -> vector<256x4xf32>
    %c1_86 = arith.constant 1 : index
    %c1_87 = arith.constant 1 : index
    %c1_88 = arith.constant 1 : index
    %c0_89 = arith.constant 0 : index
    %c0_90 = arith.constant 0 : index
    %89 = vector.load %arg2[%c1_86, %c1_87, %c1_88, %c0_89, %c0_90] : memref<2x2x2x8x4xbf16, #tpu.memory_space<vmem>>, vector<1x1x1x8x4xbf16>
    %90 = vector.shape_cast %89 : vector<1x1x1x8x4xbf16> to vector<8x4xbf16>
    %cst_91 = arith.constant dense<0.000000e+00> : vector<256x4xf32>
    %91 = tpu.matmul %85, %90, %cst_91 {dimension_numbers = #tpu.dot_dimension_numbers<[1], [0], [0], [1], [0, 0, 1, 1], [], []>} : vector<256x8xbf16>, vector<8x4xbf16>, vector<256x4xf32> -> vector<256x4xf32>
    %92 = arith.addf %88, %91 : vector<256x4xf32>
    %93 = arith.addf %92, %44 : vector<256x4xf32>
    %c0_92 = arith.constant 0 : index
    %c1_93 = arith.constant 1 : index
    %c1_94 = arith.constant 1 : index
    %c0_95 = arith.constant 0 : index
    %c0_96 = arith.constant 0 : index
    %94 = vector.load %arg4[%c0_92, %c1_93, %c1_94, %c0_95, %c0_96] : memref<1x2x2x256x4xf32, #tpu.memory_space<vmem>>, vector<1x1x1x256x4xf32>
    %95 = vector.shape_cast %94 : vector<1x1x1x256x4xf32> to vector<256x4xf32>
    %96 = vector.shape_cast %93 : vector<256x4xf32> to vector<1x1x1x256x4xf32>
    tpu.vector_store %arg4[%c0_92, %c1_93, %c1_94, %c0_95, %c0_96], %96 {strides = array<i32>} : memref<1x2x2x256x4xf32, #tpu.memory_space<vmem>>, vector<1x1x1x256x4xf32>,
    return
  }
  func.func @transform_0(%arg0: i32) -> (i32, i32, i32) {
    %c0_i32 = arith.constant 0 : i32
    %c0_i32_0 = arith.constant 0 : i32
    %c0_i32_1 = arith.constant 0 : i32
    return %arg0, %c0_i32, %c0_i32_0 : i32, i32, i32
  }
  func.func @transform_1(%arg0: i32) -> (i32, i32, i32, i32, i32) {
    %c0_i32 = arith.constant 0 : i32
    %c0_i32_0 = arith.constant 0 : i32
    %c0_i32_1 = arith.constant 0 : i32
    %c0_i32_2 = arith.constant 0 : i32
    %c0_i32_3 = arith.constant 0 : i32
    %c0_i32_4 = arith.constant 0 : i32
    return %c0_i32, %c0_i32_0, %c0_i32_1, %c0_i32_2, %c0_i32_3 : i32, i32, i32, i32, i32
  }
  func.func @transform_2(%arg0: i32) -> (i32, i32) {
    %c0_i32 = arith.constant 0 : i32
    %c0_i32_0 = arith.constant 0 : i32
    %c0_i32_1 = arith.constant 0 : i32
    return %c0_i32, %c0_i32_0 : i32, i32
  }
  func.func @transform_3(%arg0: i32) -> (i32, i32, i32, i32, i32) {
    %c0_i32 = arith.constant 0 : i32
    %c0_i32_0 = arith.constant 0 : i32
    %c0_i32_1 = arith.constant 0 : i32
    %c0_i32_2 = arith.constant 0 : i32
    %c0_i32_3 = arith.constant 0 : i32
    return %arg0, %c0_i32, %c0_i32_0, %c0_i32_1, %c0_i32_2 : i32, i32, i32, i32, i32
  }
}

</mosaic_0001>

<bundles_post_ra>
// kernel: tpu_custom_call.1
= control target key start
LH: loop header
LB: loop body
LE: loop exit
PB: predicated region body
PF: predicated region fallthrough
CT: control target
= control target key end

     0   :  { %s4994_s12 = smov 0   ;;  %s6490_s0 = inlined_call_operand.vmem [shape: bf16[2,256,4], index: 0, kind: input, shape index: {}]   ;;  %s6491_s1 = inlined_call_operand.vmem [shape: bf16[2,2,2,8,4], index: 1, kind: input, shape index: {}]   ;;  %s6492_s2 = inlined_call_operand.vmem [shape: f32[1,4], index: 2, kind: input, shape index: {}]   ;;  %s6493_s3 = inlined_call_operand.vmem [shape: f32[2,2,2,256,4], index: 3, kind: output, shape index: {}]  }
   0x1 LB: > { %s3990_s13 = sadd.s32 4294967295, %s4967_s12   ;;  %p3994_p0 = scmp.ge.s32.totalorder %s4967_s12, 1  ;;  %s4967_s12 = sphi %s4994_s12, %s13_s12  }
   0x2   : > { %p137_p1 = scmp.lt.s32.totalorder %s4967_s12, 3 }
   0x4   : > { %p138_p2 = pnand %p3994_p0, %p137_p1 }
   0x6   : > { %141 = sbr.rel (%p138_p2) target bundleno = 712 (0x2c8), region = 32 }
   0xb   : > { %p161_p3 = scmp.lt.s32.totalorder %s3990_s13, 1  ;;  %v236_v0 = vlaneseq  ;;  %s4969_s18 = smov 4   ;;  %v6503_v26 = vmov 0.0   ;;  %vm1172_vm11 = vcmask 27648  }
   0xc   : > { %s4971_s19 = smov 8   ;;  %s4973_s28 = smov 124  }
   0xd   : > { %s6568_s13 = smov (!%p161_p3, %s3990_s13), 1  ;;  %v5004_v1 = vshrl.u32 %v236_v0, 7 }
   0xe   : > { %s4397_s14 = sshll.u32 %s6568_s13, 7  ;;  %s4398_s10 = sshll.u32 %s6568_s13, 10 }
   0xf   : > { %v238_v2 = vadd.s32 8, %v5004_v1  ;;  %s5011_s17 = scalar_lea.vmem %s6490_s0, %s4397_s14  ;;  %v240_v3 = vadd.s32 24, %v5004_v1  ;;  %vm974_vm0 = vcmp.lt.s32.totalorder %v5004_v1, 7  ;;  %v242_v17 = vadd.s32 40, %v5004_v1 }
  0x10   : > { %v5015_v4 = vld [vmem:[%s5011_s17 + $0x8] sm:$0xf]  ;;  %v5018_v5 = vld [vmem:[%s5011_s17] sm:$0xf]  ;;  %v5021_v6 = vld [vmem:[%s5011_s17 + $0xc] sm:$0xf] }
  0x11   : > { %1241 = vrot.lane.b32.xlu1 %v5015_v4, %s4969_s18  ;;  %v206_v7 = vunpack.c.l.bf16 %v5015_v4  ;;  %1237 = vrot.lane.b32.xlu0 %v5018_v5, %s4969_s18  ;;  %v204_v8 = vunpack.c.l.bf16 %v5018_v5  ;;  %v207_v9 = vunpack.c.l.bf16 %v5021_v6  ;;  %v5031_v10 = vld [vmem:[%s5011_s17 + $0x4] sm:$0xf]  ;;  %v280_v11 = vand.u32 15, %v238_v2  ;;  %v5036_v13 = vld [vmem:[%s5011_s17 + $0x10] sm:$0xf] }
  0x12   : > { %v205_v12 = vunpack.c.l.bf16 %v5031_v10  ;;  %v294_v16 = vand.u32 15, %v240_v3  ;;  %v5050_v20 = vld [vmem:[%s5011_s17 + $0x14] sm:$0xf]  ;;  %v6498_v22 = vunpack.c.l.bf16 %v5036_v13  ;;  %v5059_v23 = vld [vmem:[%s5011_s17 + $0x18] sm:$0xf]  ;;  %v244_v24 = vadd.s32 56, %v5004_v1 }
  0x13   : > { %v944_v14 = vrot.slane %v206_v7, 1  ;;  %v5042_v15 = vrot.slane %v204_v8, 1  ;;  %v945_v18 = vrot.slane %v207_v9, 1  ;;  %v209_v21 = vunpack.c.l.bf16 %v5050_v20  ;;  %v5071_v32 = vld [vmem:[%s5011_s17 + $0x1c] sm:$0xf] }
  0x14   : > { %v943_v19 = vrot.slane %v205_v12, 1  ;;  %vm750_vm1 = vcmp.le.s32.totalorder %v280_v11, 14  ;;  %vm752_vm2 = vcmp.le.s32.totalorder %v294_v16, 14  ;;  %v308_v33 = vand.u32 15, %v242_v17  ;;  %v5074_v34 = vld [vmem:[%s5011_s17 + $0x20] sm:$0xf] }
  0x15   : > { %1243 = vrot.lane.b32.xlu1 %v5021_v6, %s4969_s18  ;;  %1239 = vrot.lane.b32.xlu0 %v5031_v10, %s4969_s18  ;;  %v4015_v27 = vsel %vm750_vm1, 1.0, %v6503_v26  ;;  %v1003_v29 = vsel %vm974_vm0, %v944_v14, %v945_v18  ;;  %v4016_v35 = vsel %vm752_vm2, 1.0, %v6503_v26  ;;  %v946_v36 = vrot.slane %v6498_v22, 1  ;;  %v5094_v48 = vld [vmem:[%s5011_s17 + $0x24] sm:$0xf] }
  0x16   : > { %v1005_v25 = vsel %vm974_vm0, %v5042_v15, %v943_v19  ;;  %v1004_v28 = vsel %vm974_vm0, %v943_v19, %v944_v14  ;;  %v210_v37 = vunpack.c.l.bf16 %v5059_v23  ;;  %v4433_v39 = vpack.c.bf16 %v1003_v29, %v1003_v29  ;;  %v5103_v54 = vld [vmem:[%s5011_s17 + $0x28] sm:$0xf]  ;;  %v5107_v56 = vld [vmem:[%s5011_s17 + $0x2c] sm:$0xf]  ;;  %v5110_v57 = vld [vmem:[%s5011_s17 + $0x30] sm:$0xf] }
  0x17   : > { %v4431_v30 = vpack.c.bf16 %v1005_v25, %v1005_v25  ;;  %v1008_v31 = vmul.f32 %v4015_v27, %v1004_v28  ;;  %v947_v40 = vrot.slane %v209_v21, 1  ;;  %v1002_v41 = vsel %vm974_vm0, %v945_v18, %v946_v36  ;;  %v5156_v6 = vld [vmem:[%s5011_s17 + $0x34] sm:$0xf]  ;;  %v5165_v10 = vld [vmem:[%s5011_s17 + $0x4c] sm:$0xf] }
  0x18   : > { %v211_v42 = vunpack.c.l.bf16 %v5071_v32  ;;  %v6496_v43 = vunpack.c.l.bf16 %v5074_v34  ;;  %v1010_v44 = vmul.f32 %v4016_v35, %v1002_v41  ;;  %v948_v45 = vrot.slane %v210_v37, 1 }
  0x19   : > { %1247 = vrot.lane.b32.xlu1 %v5050_v20, %s4969_s18  ;;  %1462 = vrot.lane.b32.xlu0 %v4431_v30, %s4971_s19  ;;  %v4432_v38 = vpack.c.bf16 %v1008_v31, %v1008_v31  ;;  %vm754_vm3 = vcmp.le.s32.totalorder %v308_v33, 14  ;;  %v322_v46 = vand.u32 15, %v244_v24  ;;  %v246_v49 = vadd.s32 72, %v5004_v1 }
  0x1a   : > { %v4434_v47 = vpack.c.bf16 %v1010_v44, %v1010_v44  ;;  %v949_v50 = vrot.slane %v211_v42, 1  ;;  %v4017_v51 = vsel %vm754_vm3, 1.0, %v6503_v26  ;;  %v1000_v52 = vsel %vm974_vm0, %v947_v40, %v948_v45 }
  0x1b   : > { %v950_v53 = vrot.slane %v6496_v43, 1  ;;  %vm756_vm4 = vcmp.le.s32.totalorder %v322_v46, 14  ;;  %v248_v55 = vadd.s32 88, %v5004_v1  ;;  %v1012_v58 = vmul.f32 %v4017_v51, %v1000_v52 }
  0x1c   : > { %v1001_v59 = vsel %vm974_vm0, %v946_v36, %v947_v40  ;;  %v213_v60 = vunpack.c.l.bf16 %v5094_v48  ;;  %v214_v61 = vunpack.c.l.bf16 %v5103_v54  ;;  %v4018_v62 = vsel %vm756_vm4, 1.0, %v6503_v26  ;;  %v5194_v40 = vld [vmem:[%s5011_s17 + $0x3c] sm:$0xf] }
  0x1d   : > { %1464 = vrot.lane.b32.xlu1 %v4432_v38, %s4971_s19  ;;  %1466 = vrot.lane.b32.xlu0 %v4433_v39, %s4971_s19  ;;  %v998_v63 = vsel %vm974_vm0, %v949_v50, %v950_v53  ;;  %v336_v0 = vand.u32 15, %v246_v49  ;;  %v215_v2 = vunpack.c.l.bf16 %v5107_v56  ;;  %v6495_v3 = vunpack.c.l.bf16 %v5110_v57  ;;  %v5209_v49 = vld [vmem:[%s5011_s17 + $0x50] sm:$0xf] }
  0x1e   : > { %v350_v11 = vand.u32 15, %v248_v55  ;;  %v5126_v14 = vrot.slane %v206_v7, 7  ;;  %v4435_v16 = vpack.c.bf16 %v1001_v59, %v1001_v59  ;;  %v5129_v17 = vadd.s32 104, %v5004_v1  ;;  %v5220_v55 = vld [vmem:[%s5011_s17 + $0x40] sm:$0xf] }
  0x1f   : > { %v4436_v18 = vpack.c.bf16 %v1012_v58, %v1012_v58  ;;  %v1014_v19 = vmul.f32 %v4018_v62, %v998_v63  ;;  %v951_v24 = vrot.slane %v213_v60, 1  ;;  %v952_v25 = vrot.slane %v214_v61, 1  ;;  %v5233_v62 = vld [vmem:[%s5011_s17 + $0x54] sm:$0xf]  ;;  %v5236_v63 = vld [vmem:[%s5011_s17 + $0x5c] sm:$0xf] }
  0x20   : > { %v5137_v4 = vrot.slane %v204_v8, 7  ;;  %v5141_v7 = vrot.slane %v207_v9, 7  ;;  %v999_v27 = vsel %vm974_vm0, %v948_v45, %v949_v50  ;;  %vm758_vm5 = vcmp.le.s32.totalorder %v336_v0, 14  ;;  %6519 = vst [vmem:[#allocation3_spill] sm:$0xff] %v5236_v63 }
  0x21   : > { %1468 = vrot.lane.b32.xlu1 %v4434_v47, %s4971_s19  ;;  %1245 = vrot.lane.b32.xlu0 %v5036_v13, %s4969_s18  ;;  %v5147_v28 = vrot.slane %v205_v12, 7  ;;  %v953_v29 = vrot.slane %v215_v2, 1  ;;  %vm5149_vm6 = vcmp.le.s32.totalorder %v350_v11, 14  ;;  %v954_v5 = vrot.slane %v6495_v3, 1  ;;  %v5168_v12 = vld [vmem:[%s5011_s17 + $0x48] sm:$0xf] }
  0x22   : > { %v5160_v8 = vrot.slane %v209_v21, 7  ;;  %v5162_v9 = vrot.slane %v211_v42, 7  ;;  %v4438_v31 = vpack.c.bf16 %v1014_v19, %v1014_v19  ;;  %v4019_v33 = vsel %vm758_vm5, 1.0, %v6503_v26  ;;  %v5176_v21 = vld [vmem:[%s5011_s17 + $0x38] sm:$0xf] }
  0x23   : > { %v996_v20 = vsel %vm974_vm0, %v951_v24, %v952_v25  ;;  %v5180_v35 = vrot.slane %v210_v37, 7  ;;  %v5184_v36 = vsel %vm974_vm0, %v950_v53, %v951_v24  ;;  %v4020_v38 = vsel %vm5149_vm6, 1.0, %v6503_v26  ;;  %v5301_v3 = vld [vmem:[%s5011_s17 + $0x64] sm:$0xf] }
  0x24   : > { %v5191_v39 = vsel %vm974_vm0, %v952_v25, %v953_v29  ;;  %v217_v37 = vunpack.c.l.bf16 %v5156_v6  ;;  %v223_v41 = vunpack.c.l.bf16 %v5165_v10  ;;  %v222_v42 = vunpack.c.l.bf16 %v5168_v12 }
  0x25   : > { %1251 = vrot.lane.b32.xlu1 %v5071_v32, %s4969_s18  ;;  %1249 = vrot.lane.b32.xlu0 %v5059_v23, %s4969_s18  ;;  %v4437_v32 = vpack.c.bf16 %v999_v27, %v999_v27  ;;  %v994_v23 = vsel %vm974_vm0, %v953_v29, %v954_v5  ;;  %v5201_v44 = vrot.slane %v213_v60, 7  ;;  %v5203_v45 = vrot.slane %v215_v2, 7 }
  0x26   : > { %v5205_v46 = vmul.f32 %v4019_v33, %v996_v20  ;;  %v218_v47 = vunpack.c.l.bf16 %v5176_v21  ;;  %v5213_v50 = vrot.slane %v214_v61, 7  ;;  %v4439_v51 = vpack.c.bf16 %v5184_v36, %v5184_v36 }
  0x27   : > { %v219_v52 = vunpack.c.l.bf16 %v5194_v40  ;;  %v364_v53 = vand.u32 15, %v5129_v17  ;;  %v5222_v58 = vmul.f32 %v4020_v38, %v994_v23  ;;  %v961_v60 = vrot.slane %v223_v41, 1  ;;  %v5243_v17 = vld [vmem:[%s5011_s17 + $0x58] sm:$0xf] }
  0x28   : > { %v5230_v61 = vrot.slane %v222_v42, 1  ;;  %v5238_v0 = vrot.slane %v217_v37, 7  ;;  %v955_v2 = vrot.slane %v217_v37, 1  ;;  %v252_v11 = vadd.s32 120, %v5004_v1  ;;  %6520 = vst [vmem:[#allocation4_spill] sm:$0xff] %v5243_v17 }
  0x29   : > { %1472 = vrot.lane.b32.xlu1 %v4436_v18, %s4971_s19  ;;  %1470 = vrot.lane.b32.xlu0 %v4435_v16, %s4971_s19  ;;  %v6494_v16 = vunpack.c.l.bf16 %v5209_v49  ;;  %v4440_v18 = vpack.c.bf16 %v5205_v46, %v5205_v46  ;;  %v5247_v19 = vrot.slane %v219_v52, 7  ;;  %v956_v24 = vrot.slane %v218_v47, 1 }
  0x2a   : > { %v5252_v25 = vsel %vm974_vm0, %v5230_v61, %v961_v60  ;;  %v957_v27 = vrot.slane %v219_v52, 1  ;;  %vm762_vm7 = vcmp.le.s32.totalorder %v364_v53, 14  ;;  %v6497_v29 = vunpack.c.l.bf16 %v5220_v55 }
  0x2b   : > { %v962_v30 = vrot.slane %v6494_v16, 1  ;;  %v6499_v33 = vunpack.c.l.bf16 %v5233_v62  ;;  %v6500_v20 = vunpack.c.l.bf16 %v5236_v63  ;;  %v5268_v36 = vrot.slane %v218_v47, 7  ;;  %v5285_v16 = vld [vmem:[%s5011_s17 + $0x60] sm:$0xf] }
  0x2c   : > { %v5272_v38 = vsel %vm974_vm0, %v954_v5, %v955_v2  ;;  %v378_v23 = vand.u32 15, %v252_v11  ;;  %v4021_v46 = vsel %vm762_vm7, 1.0, %v6503_v26  ;;  %v992_v52 = vsel %vm974_vm0, %v955_v2, %v956_v24  ;;  %6521 = vst [vmem:[#allocation5_spill] sm:$0xff] %v5285_v16 }
  0x2d   : > { %1476 = vrot.lane.b32.xlu1 %v4438_v31, %s4971_s19  ;;  %1474 = vrot.lane.b32.xlu0 %v4437_v32, %s4971_s19  ;;  %v5262_v31 = vld [vmem:[%s5011_s17 + $0x44] sm:$0xf]  ;;  %v254_v32 = vadd.s32 136, %v5004_v1  ;;  %v5276_v37 = vsel %vm974_vm0, %v961_v60, %v962_v30  ;;  %v256_v53 = vadd.s32 152, %v5004_v1  ;;  %v963_v47 = vrot.slane %v6499_v33, 1 }
  0x2e   : > { %v4442_v5 = vpack.c.bf16 %v5222_v58, %v5222_v58  ;;  %v958_v60 = vrot.slane %v6497_v29, 1  ;;  %v5297_v2 = vsel %vm974_vm0, %v956_v24, %v957_v27  ;;  %v221_v11 = vunpack.c.l.bf16 %v5262_v31  ;;  %v5317_v33 = vld [vmem:[%s5011_s17 + $0x6c] sm:$0xf] }
  0x2f   : > { %v392_v43 = vand.u32 15, %v254_v32  ;;  %v5309_v58 = vsel %vm974_vm0, %v962_v30, %v963_v47  ;;  %v5311_v29 = vmul.f32 %v4021_v46, %v992_v52  ;;  %vm764_vm8 = vcmp.le.s32.totalorder %v378_v23, 14  ;;  %v5329_v46 = vld [vmem:[%s5011_s17 + $0x68] sm:$0xf] }
  0x30   : > { %v6502_v22 = vunpack.c.l.bf16 %v5285_v16  ;;  %v406_v32 = vand.u32 15, %v256_v53  ;;  %v6505_v30 = vunpack.c.l.bf16 %v5301_v3  ;;  %v990_v23 = vsel %vm974_vm0, %v957_v27, %v958_v60  ;;  %v5413_v16 = vld [vmem:[%s5011_s17 + $0x7c] sm:$0xf] }
  0x31   : > { %1255 = vrot.lane.b32.xlu1 %v5094_v48, %s4969_s18  ;;  %1253 = vrot.lane.b32.xlu0 %v5074_v34, %s4969_s18  ;;  %v6501_v48 = vunpack.c.l.bf16 %v5243_v17  ;;  %v959_v53 = vrot.slane %v221_v11, 1  ;;  %v5340_v24 = vrot.slane %v221_v11, 7  ;;  %vm5342_vm9 = vcmp.le.s32.totalorder %v392_v43, 14  ;;  %v5356_v11 = vld [vmem:[%s5011_s17 + $0x70] sm:$0xf]  ;;  %6533 = vst [vmem:[#allocation12_spill] sm:$0xff] %v5413_v16 }
  0x32   : > { %v6506_v52 = vunpack.c.l.bf16 %v5329_v46  ;;  %6525 = vst [vmem:[#allocation7_spill] sm:$0xff] %v5356_v11  ;;  %v4444_v43 = vpack.c.bf16 %v5311_v29, %v5311_v29  ;;  %vm768_vm10 = vcmp.le.s32.totalorder %v406_v32, 14  ;;  %v6528_v32 = vmov 0.0  }
  0x33   : > { %v988_v29 = vsel %vm974_vm0, %v959_v53, %v5230_v61  ;;  %vm877_vm12 = vcmp.lt.s32.totalorder %v5004_v1, 1  ;;  %vm1764_vm2 = vcmask 1043456   ;;  %vm1039_vm3 = vcmask 93184  }
  0x34   : > { %vm1715_vm4 = vcmask 64512  }
  0x35   : > { %1259 = vrot.lane.b32.xlu1 %v5107_v56, %s4969_s18  ;;  %1257 = vrot.lane.b32.xlu0 %v5103_v54, %s4969_s18  ;;  %v965_v56 = vrot.slane %v6500_v20, 1  ;;  %v964_v54 = vrot.slane %v6501_v48, 1 }
  0x37   : > { %v5321_v20 = vsel %vm974_vm0, %v963_v47, %v964_v54  ;;  %v5325_v48 = vsel %vm974_vm0, %v964_v54, %v965_v56  ;;  %v966_v47 = vrot.slane %v6502_v22, 1  ;;  %v4022_v54 = vsel %vm764_vm8, 1.0, %v6503_v26 }
  0x38   : > { %6522 = vst [vmem:[#allocation6_spill] sm:$0xff] %v5325_v48  ;;  %v967_v22 = vrot.slane %v6505_v30, 1  ;;  %v5366_v26 = vrot.slane %v222_v42, 7  ;;  %v5373_v30 = vmul.f32 %v4022_v54, %v990_v23  ;;  %v968_v42 = vrot.slane %v6506_v52, 1 }
  0x39   : > { %1480 = vrot.lane.b32.xlu1 %v4440_v18, %s4971_s19  ;;  %1478 = vrot.lane.b32.xlu0 %v4439_v51, %s4971_s19  ;;  %v258_v18 = vadd.s32 168, %v5004_v1  ;;  %v5350_v27 = vsel %vm974_vm0, %v965_v56, %v966_v47  ;;  %v5362_v51 = vrot.slane %v223_v41, 7  ;;  %v6526_v56 = vpack.c.bf16 %v5191_v39, %v5191_v39 }
  0x3a   : > { %v5380_v41 = vsel %vm974_vm0, %v958_v60, %v959_v53  ;;  %v4023_v39 = vsel %vm5342_vm9, 1.0, %v6528_v32  ;;  %v6529_v23 = vunpack.c.l.bf16 %v5317_v33  ;;  %v5394_v61 = vsel %vm974_vm0, %v966_v47, %v967_v22 }
  0x3b   : > { %6530 = vst [vmem:[#allocation9_spill] sm:$0xff] %v5394_v61  ;;  %v4024_v60 = vsel %vm768_vm10, 1.0, %v6528_v32  ;;  %v420_v53 = vand.u32 15, %v258_v18  ;;  %v260_v52 = vadd.s32 184, %v5004_v1  ;;  %v5401_v48 = vsel %vm974_vm0, %v967_v22, %v968_v42  ;;  %v5430_v61 = vld [vmem:[%s5011_s17 + $0x78] sm:$0xf] }
  0x3c   : > { %v969_v54 = vrot.slane %v6529_v23, 1  ;;  %6531 = vst [vmem:[#allocation10_spill] sm:$0xff] %v5401_v48  ;;  %v4446_v22 = vpack.c.bf16 %v5373_v30, %v5373_v30  ;;  %v5421_v18 = vmul.f32 %v4023_v39, %v988_v29  ;;  %v239_v30 = vadd.s32 16, %v5004_v1 }
  0x3d   : > { %1484 = vrot.lane.b32.xlu1 %v4442_v5, %s4971_s19  ;;  %1482 = vrot.lane.b32.xlu0 %v6526_v56, %s4971_s19  ;;  %v5385_v5 = vld [vmem:[%s5011_s17 + $0x74] sm:$0xf]  ;;  %v6509_v56 = vunpack.c.l.bf16 %v5356_v11  ;;  %v6536_v29 = vunpack.c.l.bf16 %v5236_v63  ;;  %vm770_vm13 = vcmp.le.s32.totalorder %v420_v53, 14  ;;  %v273_v11 = vand.u32 15, %v5004_v1  ;;  %s6021_s17 = scalar_lea.vmem %s6493_s3, %s4398_s10 }
  0x3e   : > { %6527 = vst [vmem:[#allocation8_spill] sm:$0xff] %v5385_v5  ;;  %v5409_v47 = vsel %vm974_vm0, %v968_v42, %v969_v54  ;;  %v6534_v42 = vunpack.c.l.bf16 %v5233_v62  ;;  %v6537_v48 = vunpack.c.l.bf16 %v5385_v5 }
  0x3f   : > { %v970_v23 = vrot.slane %v6509_v56, 1  ;;  %6532 = vst [vmem:[#allocation11_spill] sm:$0xff] %v5409_v47  ;;  %v5443_v39 = vrot.slane %v6536_v29, 7  ;;  %v235_v56 = vunpack.c.l.bf16 %v5413_v16  ;;  %v4025_v29 = vsel %vm770_vm13, 1.0, %v6528_v32 }
  0x40   : > { %v5427_v59 = vrot.slane %v6534_v42, 7  ;;  %v434_v42 = vand.u32 15, %v260_v52  ;;  %v907_v52 = vsel %vm877_vm12, %v5147_v28, %v5126_v14  ;;  %vm653_vm15 = vcmp.ge.s32.totalorder %v273_v11, 1 }
  0x41   : > { %1263 = vrot.lane.b32.xlu1 %v5156_v6, %s4969_s18  ;;  %1261 = vrot.lane.b32.xlu0 %v5110_v57, %s4969_s18  ;;  %v5433_v6 = vmul.f32 %v4024_v60, %v5276_v37  ;;  %v5437_v47 = vsel %vm974_vm0, %v969_v54, %v970_v23  ;;  %v971_v37 = vrot.slane %v6537_v48, 1  ;;  %v287_v60 = vand.u32 15, %v239_v30 }
  0x42   : > { %6535 = vst [vmem:[#allocation13_spill] sm:$0xff] %v5437_v47  ;;  %v5458_v53 = vrot.slane %v235_v56, 7  ;;  %v906_v48 = vsel %vm877_vm12, %v5126_v14, %v5141_v7  ;;  %v6538_v30 = vunpack.c.l.bf16 %v5243_v17  ;;  %v3999_v16 = vsel %vm653_vm15, 1.0, %v6528_v32 }
  0x43   : > { %vm655_vm14 = vcmp.ge.s32.totalorder %v287_v60, 1  ;;  %v6539_v47 = vunpack.c.l.bf16 %v5430_v61  ;;  %v6540_v11 = vpack.c.bf16 %v5272_v38, %v5272_v38  ;;  %vm772_vm1 = vcmp.le.s32.totalorder %v434_v42, 14 }
  0x44   : > { %v4000_v54 = vsel %vm655_vm14, 1.0, %v6528_v32  ;;  %v909_v14 = vsel %vm877_vm12, %v5458_v53, %v5137_v4  ;;  %v4450_v42 = vpack.c.bf16 %v5433_v6, %v5433_v6 }
  0x45   : > { %1267 = vrot.lane.b32.xlu1 %v5194_v40, %s4969_s18  ;;  %1265 = vrot.lane.b32.xlu0 %v5176_v21, %s4969_s18  ;;  %v908_v40 = vsel %vm877_vm12, %v5137_v4, %v5147_v28  ;;  %v5470_v21 = vrot.slane %v6538_v30, 7  ;;  %v972_v28 = vrot.slane %v6539_v47, 1  ;;  %v912_v5 = vmul.f32 %v4000_v54, %v907_v52 }
  0x46   : > { %v910_v17 = vmul.f32 %v3999_v16, %v909_v14  ;;  %v4402_v30 = vpack.c.bf16 %v906_v48, %v906_v48  ;;  %v4400_v63 = vpack.c.bf16 %v908_v40, %v908_v40  ;;  %v5492_v4 = vsel %vm974_vm0, %v970_v23, %v971_v37  ;;  %v4096_v40 = vld [vmem:[%s6491_s1 + $0x4] sm:$0xf] }
  0x47   : > { %v5488_v60 = vsel %vm974_vm0, %v971_v37, %v972_v28  ;;  %v6541_v16 = vunpack.c.l.bf16 %v5036_v13  ;;  %v5499_v54 = vmul.f32 %v4025_v29, %v5321_v20  ;;  %v4401_v38 = vpack.c.bf16 %v912_v5, %v912_v5  ;;  %4871 = vmatprep.subr.msk.bf16.mxu0 %vm1764_vm2, %v4096_v40 }
  0x48   : > { %v4399_v52 = vpack.c.bf16 %v910_v17, %v910_v17  ;;  %1176 = vst.msk [vmem:[#allocation2 + $0x14] sm:$0xf] %vm1172_vm11, %v4402_v30  ;;  %1174 = vst.msk [vmem:[#allocation2 + $0xc] sm:$0xf] %vm1172_vm11, %v4400_v63  ;;  %v973_v23 = vrot.slane %v235_v56, 1  ;;  %v241_v37 = vadd.s32 32, %v5004_v1  ;;  %v4451_v20 = vpack.c.bf16 %v5309_v58, %v5309_v58 }
  0x49   : > { %1488 = vrot.lane.b32.xlu1 %v4444_v43, %s4971_s19  ;;  %1486 = vrot.lane.b32.xlu0 %v6540_v11, %s4971_s19  ;;  %v849_v47 = vrot.slane %v6541_v16, 7  ;;  %v4448_v43 = vpack.c.bf16 %v5421_v18, %v5421_v18  ;;  %v4026_v5 = vsel %vm772_vm1, 1.0, %v6528_v32  ;;  %v6542_v17 = vunpack.c.l.bf16 %v5301_v3  ;;  %1175 = vst.msk [vmem:[#allocation2 + $0x10] sm:$0xf] %vm1172_vm11, %v4401_v38  ;;  %v1632_v56 = vld [vmem:[%s6491_s1] sm:$0xf] }
  0x4a   : > { %1173 = vst.msk [vmem:[#allocation2 + $0x8] sm:$0xf] %vm1172_vm11, %v4399_v52  ;;  %v6543_v29 = vpack.c.bf16 %v5297_v2, %v5297_v2  ;;  %v5530_v14 = vadd.s32 200, %v5004_v1  ;;  %v5535_v30 = vsel %vm974_vm0, %v973_v23, %v5042_v15  ;;  %v5539_v11 = vsel %vm974_vm0, %v972_v28, %v973_v23  ;;  %4872 = vmatprep.subr.msk.bf16.mxu1 %vm1764_vm2, %v1632_v56 }
  0x4b   : > { %v904_v13 = vsel %vm877_vm12, %v849_v47, %v5160_v8  ;;  %v5514_v48 = vrot.slane %v6542_v17, 7  ;;  %v301_v16 = vand.u32 15, %v241_v37  ;;  %v905_v2 = vsel %vm877_vm12, %v5141_v7, %v849_v47 }
  0x4c   : > { %v4404_v63 = vpack.c.bf16 %v904_v13, %v904_v13  ;;  %v902_v15 = vsel %vm877_vm12, %v5180_v35, %v5162_v9  ;;  %v5552_v38 = vmul.f32 %v4026_v5, %v5350_v27  ;;  %v6544_v28 = vunpack.c.l.bf16 %v5317_v33 }
  0x4d   : > { %1492 = vrot.lane.b32.xlu1 %v4446_v22, %s4971_s19  ;;  %1490 = vrot.lane.b32.xlu0 %v6543_v29, %s4971_s19  ;;  %v4452_v22 = vpack.c.bf16 %v5499_v54, %v5499_v54  ;;  %vm657_vm0 = vcmp.ge.s32.totalorder %v301_v16, 1  ;;  %v1938_v13 = vsel %vm1764_vm2, %v1632_v56, 0  ;;  %v6545_v7 = vunpack.c.l.bf16 %v5329_v46 }
  0x4e   : > { %1178 = vst.msk [vmem:[#allocation2 + $0x1c] sm:$0xf] %vm1172_vm11, %v4404_v63  ;;  %v5556_v52 = vrot.slane %v6544_v28, 7  ;;  %v4001_v23 = vsel %vm657_vm0, 1.0, %v6528_v32  ;;  %4634 = vmatpush3.bf16.msra.mxu1 %v1938_v13  ;;  %v4406_v27 = vpack.c.bf16 %v902_v15, %v902_v15  ;;  %v243_v37 = vadd.s32 48, %v5004_v1 }
  0x4f   : > { %v5563_v47 = vrot.slane %v6545_v7, 7  ;;  %v448_v5 = vand.u32 15, %v5530_v14  ;;  %v914_v17 = vmul.f32 %v4001_v23, %v905_v2  ;;  %v903_v56 = vsel %vm877_vm12, %v5160_v8, %v5180_v35 }
  0x50   : > { %1180 = vst.msk [vmem:[#allocation2 + $0x24] sm:$0xf] %vm1172_vm11, %v4406_v27  ;;  %v315_v63 = vand.u32 15, %v243_v37  ;;  %v4972_v29 = vmov 0   ;;  %v6546_v2 = vunpack.c.l.bf16 %v5074_v34  ;;  %v245_v28 = vadd.s32 64, %v5004_v1 }
  0x51   : > { %1271 = vrot.lane.b32.xlu1 %v5262_v31, %s4969_s18  ;;  %1269 = vrot.lane.b32.xlu0 %v5220_v55, %s4969_s18  ;;  %1040 = vst.msk [vmem:[#allocation2] sm:$0xf] %vm1039_vm3, %v4972_v29  ;;  %1041 = vst.msk [vmem:[#allocation2 + $0x4] sm:$0xf] %vm1039_vm3, %v4972_v29  ;;  %v1766_v31 = vsel %vm1764_vm2, %v4096_v40, 0  ;;  %v4403_v16 = vpack.c.bf16 %v914_v17, %v914_v17  ;;  %v898_v8 = vsel %vm877_vm12, %v5213_v50, %v5203_v45 }
  0x52   : > { %1042 = vst.msk [vmem:[#allocation2 + $0x88] sm:$0xf] %vm1039_vm3, %v4972_v29  ;;  %1043 = vst.msk [vmem:[#allocation2 + $0x8c] sm:$0xf] %vm1039_vm3, %v4972_v29  ;;  %4600 = vmatpush3.bf16.msra.mxu0 %v1766_v31  ;;  %v853_v15 = vrot.slane %v6546_v2, 7  ;;  %vm659_vm5 = vcmp.ge.s32.totalorder %v315_v63, 1  ;;  %v4410_v35 = vpack.c.bf16 %v898_v8, %v898_v8  ;;  %v899_v40 = vsel %vm877_vm12, %v5201_v44, %v5213_v50 }
  0x53   : > { %v247_v13 = vadd.s32 80, %v5004_v1  ;;  %1177 = vst.msk [vmem:[#allocation2 + $0x18] sm:$0xf] %vm1172_vm11, %v4403_v16  ;;  %v4002_v34 = vsel %vm659_vm5, 1.0, %v6528_v32  ;;  %v329_v23 = vand.u32 15, %v245_v28  ;;  %v249_v63 = vadd.s32 96, %v5004_v1 }
  0x54   : > { %v900_v7 = vsel %vm877_vm12, %v853_v15, %v5201_v44  ;;  %v901_v27 = vsel %vm877_vm12, %v5162_v9, %v853_v15  ;;  %v916_v50 = vmul.f32 %v4002_v34, %v903_v56  ;;  %1184 = vst.msk [vmem:[#allocation2 + $0x34] sm:$0xf] %vm1172_vm11, %v4410_v35  ;;  %v894_v44 = vsel %vm877_vm12, %v5268_v36, %v5247_v19 }
  0x55   : > { %1275 = vrot.lane.b32.xlu1 %v5165_v10, %s4969_s18  ;;  %1273 = vrot.lane.b32.xlu0 %v5168_v12, %s4969_s18  ;;  %v4408_v37 = vpack.c.bf16 %v900_v7, %v900_v7  ;;  %v343_v10 = vand.u32 15, %v247_v13  ;;  %v6547_v12 = vunpack.c.l.bf16 %v5110_v57  ;;  %vm661_vm6 = vcmp.ge.s32.totalorder %v329_v23, 1 }
  0x56   : > { %v251_v29 = vadd.s32 112, %v5004_v1  ;;  %v4405_v31 = vpack.c.bf16 %v916_v50, %v916_v50  ;;  %v4003_v9 = vsel %vm661_vm6, 1.0, %v6528_v32  ;;  %v6548_v56 = vpack.c.bf16 %v5380_v41, %v5380_v41 }
  0x57   : > { %v857_v17 = vrot.slane %v6547_v12, 7  ;;  %1182 = vst.msk [vmem:[#allocation2 + $0x2c] sm:$0xf] %vm1172_vm11, %v4408_v37  ;;  %vm663_vm7 = vcmp.ge.s32.totalorder %v343_v10, 1  ;;  %v918_v2 = vmul.f32 %v4003_v9, %v901_v27  ;;  %v357_v13 = vand.u32 15, %v249_v63 }
  0x58   : > { %v4892_v16 = vld [vmem:[#allocation2] sm:$0xff]   ;;  %v4004_v15 = vsel %vm663_vm7, 1.0, %v6528_v32  ;;  %1179 = vst.msk [vmem:[#allocation2 + $0x20] sm:$0xf] %vm1172_vm11, %v4405_v31  ;;  %v4414_v18 = vpack.c.bf16 %v894_v44, %v894_v44  ;;  %v895_v41 = vsel %vm877_vm12, %v5238_v0, %v5268_v36  ;;  %v371_v34 = vand.u32 15, %v251_v29 }
  0x59   : > { %v896_v57 = vsel %vm877_vm12, %v857_v17, %v5238_v0  ;;  %1496 = vrot.lane.b32.xlu1 %v4448_v43, %s4971_s19  ;;  %1494 = vrot.lane.b32.xlu0 %v6548_v56, %s4971_s19  ;;  %v897_v8 = vsel %vm877_vm12, %v5203_v45, %v857_v17  ;;  %v920_v35 = vmul.f32 %v4004_v15, %v899_v40  ;;  %v6549_v7 = vunpack.c.l.bf16 %v5220_v55 }
  0x5a   : > { %v4412_v28 = vpack.c.bf16 %v896_v57, %v896_v57  ;;  %4635 = vmatprep.mubr.msk.bf16.mxu1 %vm1715_vm4, %v4892_v16  ;;  %v4407_v43 = vpack.c.bf16 %v918_v2, %v918_v2  ;;  %v253_v45 = vadd.s32 128, %v5004_v1  ;;  %vm665_vm8 = vcmp.ge.s32.totalorder %v357_v13, 1  ;;  %1188 = vst.msk [vmem:[#allocation2 + $0x44] sm:$0xf] %vm1172_vm11, %v4414_v18 }
  0x5b   : > { %v861_v23 = vrot.slane %v6549_v7, 7  ;;  %v4409_v27 = vpack.c.bf16 %v920_v35, %v920_v35  ;;  %v890_v0 = vsel %vm877_vm12, %v5366_v26, %v5362_v51  ;;  %v255_v36 = vadd.s32 144, %v5004_v1  ;;  %v6554_v7 = vld [vmem:[#allocation3_spill] sm:$0xff] }
  0x5c   : > { %1186 = vst.msk [vmem:[#allocation2 + $0x3c] sm:$0xf] %vm1172_vm11, %v4412_v28  ;;  %v6550_v55 = vpack.c.bf16 %v5252_v25, %v5252_v25  ;;  %1181 = vst.msk [vmem:[#allocation2 + $0x28] sm:$0xf] %vm1172_vm11, %v4407_v43  ;;  %v4005_v40 = vsel %vm665_vm8, 1.0, %v6528_v32  ;;  %vm667_vm9 = vcmp.ge.s32.totalorder %v371_v34, 1  ;;  %v4418_v17 = vpack.c.bf16 %v890_v0, %v890_v0 }
  0x5d   : > { %1500 = vrot.lane.b32.xlu1 %v4450_v42, %s4971_s19  ;;  %v892_v50 = vsel %vm877_vm12, %v861_v23, %v5340_v24  ;;  %v385_v37 = vand.u32 15, %v253_v45  ;;  %1183 = vst.msk [vmem:[#allocation2 + $0x30] sm:$0xf] %vm1172_vm11, %v4409_v27  ;;  %v922_v10 = vmul.f32 %v4005_v40, %v897_v8  ;;  %v4006_v6 = vsel %vm667_vm9, 1.0, %v6528_v32 }
  0x5e   : > { %1498 = vrot.lane.b32.xlu0 %v6550_v55, %s4971_s19  ;;  %v4416_v42 = vpack.c.bf16 %v892_v50, %v892_v50  ;;  %v893_v25 = vsel %vm877_vm12, %v5247_v19, %v861_v23  ;;  %v924_v12 = vmul.f32 %v4006_v6, %v895_v41  ;;  %v399_v63 = vand.u32 15, %v255_v36  ;;  %1192 = vst.msk [vmem:[#allocation2 + $0x54] sm:$0xf] %vm1172_vm11, %v4418_v17  ;;  %v6552_v41 = vld [vmem:[#allocation5_spill] sm:$0xff]  ;;  %v6555_v23 = vld [vmem:[#allocation4_spill] sm:$0xff] }
  0x5f   : > { %vm669_vm10 = vcmp.ge.s32.totalorder %v385_v37, 1  ;;  %v4411_v44 = vpack.c.bf16 %v922_v10, %v922_v10  ;;  %v891_v31 = vsel %vm877_vm12, %v5340_v24, %v5366_v26  ;;  %v6551_v9 = vunpack.c.l.bf16 %v5209_v49 }
  0x60   : > { %1190 = vst.msk [vmem:[#allocation2 + $0x4c] sm:$0xf] %vm1172_vm11, %v4416_v42  ;;  %v4007_v29 = vsel %vm669_vm10, 1.0, %v6528_v32  ;;  %v4413_v19 = vpack.c.bf16 %v924_v12, %v924_v12  ;;  %vm671_vm13 = vcmp.ge.s32.totalorder %v399_v63, 1  ;;  %v257_v16 = vadd.s32 160, %v5004_v1  ;;  %v6556_v42 = vld [vmem:[#allocation6_spill] sm:$0xff] }
  0x61   : > { %v865_v57 = vrot.slane %v6551_v9, 7  ;;  %1279 = vrot.lane.b32.xlu1 %v5233_v62, %s4969_s18  ;;  %v926_v56 = vmul.f32 %v4007_v29, %v893_v25  ;;  %v5677_v2 = vadd.s32 216, %v5004_v1  ;;  %1185 = vst.msk [vmem:[#allocation2 + $0x38] sm:$0xf] %vm1172_vm11, %v4411_v44  ;;  %v4008_v26 = vsel %vm671_vm13, 1.0, %v6528_v32  ;;  %v6557_v29 = vld [vmem:[#allocation8_spill] sm:$0xff] }
  0x62   : > { %1277 = vrot.lane.b32.xlu0 %v5209_v49, %s4969_s18  ;;  %v886_v49 = vsel %vm877_vm12, %v5470_v21, %v5443_v39  ;;  %1187 = vst.msk [vmem:[#allocation2 + $0x40] sm:$0xf] %vm1172_vm11, %v4413_v19  ;;  %v928_v15 = vmul.f32 %v4008_v26, %v891_v31  ;;  %v413_v8 = vand.u32 15, %v257_v16  ;;  %v259_v18 = vadd.s32 176, %v5004_v1 }
  0x63   : > { %v888_v62 = vsel %vm877_vm12, %v865_v57, %v5427_v59  ;;  %v4415_v24 = vpack.c.bf16 %v926_v56, %v926_v56  ;;  %v889_v35 = vsel %vm877_vm12, %v5362_v51, %v865_v57  ;;  %v4422_v13 = vpack.c.bf16 %v886_v49, %v886_v49  ;;  %v6559_v56 = vld [vmem:[#allocation7_spill] sm:$0xff] }
  0x64   : > { %v4420_v28 = vpack.c.bf16 %v888_v62, %v888_v62  ;;  %v6553_v43 = vunpack.c.l.bf16 %v6552_v41  ;;  %v4417_v45 = vpack.c.bf16 %v928_v15, %v928_v15  ;;  %vm673_vm14 = vcmp.ge.s32.totalorder %v413_v8, 1 }
  0x65   : > { %1283 = vrot.lane.b32.xlu1 %v6554_v7, %s4969_s18  ;;  %1189 = vst.msk [vmem:[#allocation2 + $0x48] sm:$0xf] %vm1172_vm11, %v4415_v24  ;;  %v261_v51 = vadd.s32 192, %v5004_v1  ;;  %v882_v27 = vsel %vm877_vm12, %v5563_v47, %v5556_v52  ;;  %v4009_v0 = vsel %vm673_vm14, 1.0, %v6528_v32  ;;  %1196 = vst.msk [vmem:[#allocation2 + $0x64] sm:$0xf] %vm1172_vm11, %v4422_v13  ;;  %v887_v55 = vsel %vm877_vm12, %v5427_v59, %v5470_v21 }
  0x66   : > { %v869_v34 = vrot.slane %v6553_v43, 7  ;;  %1281 = vrot.lane.b32.xlu0 %v6555_v23, %s4969_s18  ;;  %1194 = vst.msk [vmem:[#allocation2 + $0x5c] sm:$0xf] %vm1172_vm11, %v4420_v28  ;;  %v427_v36 = vand.u32 15, %v259_v18  ;;  %1191 = vst.msk [vmem:[#allocation2 + $0x50] sm:$0xf] %vm1172_vm11, %v4417_v45  ;;  %v930_v50 = vmul.f32 %v4009_v0, %v889_v35  ;;  %v4426_v6 = vpack.c.bf16 %v882_v27, %v882_v27 }
  0x67   : > { %v441_v10 = vand.u32 15, %v261_v51  ;;  %v4453_v25 = vpack.c.bf16 %v6556_v42, %v6556_v42  ;;  %v263_v59 = vadd.s32 208, %v5004_v1  ;;  %v4454_v21 = vpack.c.bf16 %v5552_v38, %v5552_v38  ;;  %v6562_v18 = vld [vmem:[#allocation10_spill] sm:$0xff]  ;;  %v6563_v51 = vld [vmem:[#allocation9_spill] sm:$0xff] }
  0x68   : > { %v884_v40 = vsel %vm877_vm12, %v869_v34, %v5514_v48  ;;  %vm675_vm15 = vcmp.ge.s32.totalorder %v427_v36, 1  ;;  %v885_v12 = vsel %vm877_vm12, %v5443_v39, %v869_v34  ;;  %v4419_v17 = vpack.c.bf16 %v930_v50, %v930_v50  ;;  %1200 = vst.msk [vmem:[#allocation2 + $0x74] sm:$0xf] %vm1172_vm11, %v4426_v6  ;;  %v6564_v36 = vld [vmem:[#allocation13_spill] sm:$0xff] }
  0x69   : > { %v4424_v37 = vpack.c.bf16 %v884_v40, %v884_v40  ;;  %1504 = vrot.lane.b32.xlu1 %v4452_v22, %s4971_s19  ;;  %v4010_v63 = vsel %vm675_vm15, 1.0, %v6528_v32  ;;  %vm677_vm1 = vcmp.ge.s32.totalorder %v441_v10, 1  ;;  %v455_v22 = vand.u32 15, %v263_v59 }
  0x6a   : > { %1502 = vrot.lane.b32.xlu0 %v4451_v20, %s4971_s19  ;;  %v932_v39 = vmul.f32 %v4010_v63, %v887_v55  ;;  %v4011_v54 = vsel %vm677_vm1, 1.0, %v6528_v32  ;;  %v265_v44 = vadd.s32 224, %v5004_v1  ;;  %vm774_vm0 = vcmp.le.s32.totalorder %v448_v5, 14  ;;  %1193 = vst.msk [vmem:[#allocation2 + $0x58] sm:$0xf] %vm1172_vm11, %v4419_v17 }
  0x6b   : > { %1198 = vst.msk [vmem:[#allocation2 + $0x6c] sm:$0xf] %vm1172_vm11, %v4424_v37  ;;  %v462_v58 = vand.u32 15, %v5677_v2  ;;  %v934_v20 = vmul.f32 %v4011_v54, %v885_v12  ;;  %v883_v38 = vsel %vm877_vm12, %v5514_v48, %v5563_v47  ;;  %v6558_v31 = vunpack.c.l.bf16 %v6557_v29  ;;  %v4146_v12 = vld [vmem:[%s6491_s1 + $0x8] sm:$0xf] }
  0x6c   : > { %v4421_v57 = vpack.c.bf16 %v932_v39, %v932_v39  ;;  %vm679_vm3 = vcmp.ge.s32.totalorder %v455_v22, 1  ;;  %v469_v19 = vand.u32 15, %v265_v44  ;;  %v6560_v16 = vunpack.c.l.bf16 %v6559_v56  ;;  %4874 = vmatprep.subr.msk.bf16.mxu1 %vm1764_vm2, %v4146_v12  ;;  %v6566_v39 = vld [vmem:[#allocation12_spill] sm:$0xff] }
  0x6d   : > { %v874_v9 = vrot.slane %v6558_v31, 7  ;;  %1508 = vrot.lane.b32.xlu1 %v4454_v21, %s4971_s19  ;;  %v4423_v14 = vpack.c.bf16 %v934_v20, %v934_v20  ;;  %v4012_v5 = vsel %vm679_vm3, 1.0, %v6528_v32  ;;  %v4027_v26 = vsel %vm774_vm0, 1.0, %v6528_v32 }
  0x6e   : > { %1506 = vrot.lane.b32.xlu0 %v4453_v25, %s4971_s19  ;;  %v873_v2 = vrot.slane %v6560_v16, 7  ;;  %1195 = vst.msk [vmem:[#allocation2 + $0x60] sm:$0xf] %vm1172_vm11, %v4421_v57  ;;  %v936_v48 = vmul.f32 %v4012_v5, %v883_v38  ;;  %vm681_vm5 = vcmp.ge.s32.totalorder %v469_v19, 1  ;;  %v267_v47 = vadd.s32 240, %v5004_v1 }
  0x6f   : > { %vm776_vm6 = vcmp.le.s32.totalorder %v462_v58, 14  ;;  %v6561_v62 = vunpack.c.l.bf16 %v5430_v61  ;;  %1197 = vst.msk [vmem:[#allocation2 + $0x68] sm:$0xf] %vm1172_vm11, %v4423_v14  ;;  %v4013_v24 = vsel %vm681_vm5, 1.0, %v6528_v32  ;;  %v1032_v43 = vmul.f32 %v4027_v26, %v6562_v18 }
  0x70   : > { %v881_v15 = vsel %vm877_vm12, %v5556_v52, %v873_v2  ;;  %v4425_v28 = vpack.c.bf16 %v936_v48, %v936_v48  ;;  %v880_v8 = vsel %vm877_vm12, %v873_v2, %v874_v9  ;;  %v483_v13 = vand.u32 15, %v267_v47 }
  0x71   : > { %v875_v49 = vrot.slane %v6561_v62, 7  ;;  %v938_v35 = vmul.f32 %v4013_v24, %v881_v15  ;;  %1287 = vrot.lane.b32.xlu1 %v5301_v3, %s4969_s18  ;;  %v4428_v34 = vpack.c.bf16 %v880_v8, %v880_v8  ;;  %v4028_v7 = vsel %vm776_vm6, 1.0, %v6528_v32 }
  0x72   : > { %1285 = vrot.lane.b32.xlu0 %v6552_v41, %s4969_s18  ;;  %1199 = vst.msk [vmem:[#allocation2 + $0x70] sm:$0xf] %vm1172_vm11, %v4425_v28  ;;  %vm683_vm7 = vcmp.ge.s32.totalorder %v483_v13, 1  ;;  %v266_v23 = vadd.s32 232, %v5004_v1  ;;  %v4455_v41 = vpack.c.bf16 %v6563_v51, %v6563_v51  ;;  %v4456_v0 = vpack.c.bf16 %v1032_v43, %v1032_v43 }
  0x73   : > { %v4427_v52 = vpack.c.bf16 %v938_v35, %v938_v35  ;;  %1202 = vst.msk [vmem:[#allocation2 + $0x7c] sm:$0xf] %vm1172_vm11, %v4428_v34  ;;  %v4014_v45 = vsel %vm683_vm7, 1.0, %v6528_v32  ;;  %v879_v3 = vsel %vm877_vm12, %v874_v9, %v875_v49  ;;  %v1034_v55 = vmul.f32 %v4028_v7, %v6564_v36 }
  0x74   : > { %v940_v27 = vmul.f32 %v4014_v45, %v879_v3  ;;  %v878_v40 = vsel %vm877_vm12, %v875_v49, %v5458_v53  ;;  %v476_v10 = vand.u32 15, %v266_v23  ;;  %v268_v6 = vadd.s32 248, %v5004_v1  ;;  %v4147_v53 = vld [vmem:[%s6491_s1 + $0xc] sm:$0xf] }
  0x75   : > { %1201 = vst.msk [vmem:[#allocation2 + $0x78] sm:$0xf] %vm1172_vm11, %v4427_v52  ;;  %1291 = vrot.lane.b32.xlu1 %v5317_v33, %s4969_s18  ;;  %v4430_v50 = vpack.c.bf16 %v878_v40, %v878_v40  ;;  %v4458_v33 = vpack.c.bf16 %v1034_v55, %v1034_v55  ;;  %4873 = vmatprep.subr.msk.bf16.mxu0 %vm1764_vm2, %v4147_v53  ;;  %vm1558_vm9 = vcmask 93248   ;;  %v2539_v5 = vsel %vm1764_vm2, %v4146_v12, 0 }
  0x76   : > { %1289 = vrot.lane.b32.xlu0 %v5329_v46, %s4969_s18  ;;  %v4429_v37 = vpack.c.bf16 %v940_v27, %v940_v27  ;;  %v6565_v46 = vld [vmem:[#allocation11_spill] sm:$0xff]  ;;  %vm778_vm8 = vcmp.le.s32.totalorder %v476_v10, 14  ;;  %v490_v25 = vand.u32 15, %v268_v6  ;;  %v2365_v48 = vsel %vm1764_vm2, %v4147_v53, 0 }
  0x77   : > { %1204 = vst.msk [vmem:[#allocation2 + $0x84] sm:$0xf] %vm1172_vm11, %v4430_v50  ;;  %v4457_v42 = vpack.c.bf16 %v6565_v46, %v6565_v46  ;;  %v4029_v1 = vsel %vm778_vm8, 1.0, %v6528_v32  ;;  %v5878_v50 = vld [vmem:[%s6491_s1 + $0x14] sm:$0xf]  ;;  %vm2133_vm10 = vcmask 31744  }
  0x78   : > { %1203 = vst.msk [vmem:[#allocation2 + $0x80] sm:$0xf] %vm1172_vm11, %v4429_v37  ;;  %vm780_vm12 = vcmp.le.s32.totalorder %v490_v25, 14  ;;  %vm1333_vm11 = vcmask 60448   ;;  %v1036_v59 = vmul.f32 %v4029_v1, %v5488_v60  ;;  %v5883_v37 = vld [vmem:[%s6491_s1 + $0x10] sm:$0xf] }
  0x79   : > { %1512 = vrot.lane.b32.xlu1 %v4456_v0, %s4971_s19  ;;  %v4030_v21 = vsel %vm780_vm12, 1.0, %v6528_v32  ;;  %v4459_v32 = vpack.c.bf16 %v5492_v4, %v5492_v4  ;;  %v4893_v4 = vld [vmem:[#allocation2] sm:$0xff]  }
  0x7a   : > { %1510 = vrot.lane.b32.xlu0 %v4455_v41, %s4971_s19  ;;  %v4460_v54 = vpack.c.bf16 %v1036_v59, %v1036_v59  ;;  %v1038_v60 = vmul.f32 %v4030_v21, %v5535_v30 }
  0x7c   : > { %v4462_v58 = vpack.c.bf16 %v1038_v60, %v1038_v60 }
  0x7d   : > { %1516 = vrot.lane.b32.xlu1 %v4458_v33, %s4971_s19 }
  0x7e   : > { %1514 = vrot.lane.b32.xlu0 %v4457_v42, %s4971_s19 }
  0x81   : > { %1295 = vrot.lane.b32.xlu1 %v6557_v29, %s4969_s18 }
  0x82   : > { %1293 = vrot.lane.b32.xlu0 %v6559_v56, %s4969_s18 }
  0x83   : > { %v1242_v17 = vpop.permute.xlu1 %1241  ;;  %v1238_v63 = vpop.permute.xlu0 %1237 }
  0x84   : > { %1336 = vst.msk [vmem:[#allocation2 + $0x10] sm:$0xf] %vm1333_vm11, %v1242_v17  ;;  %1334 = vst.msk [vmem:[#allocation2 + $0x8] sm:$0xf] %vm1333_vm11, %v1238_v63 }
  0x85   : > { %1299 = vrot.lane.b32.xlu1 %v6566_v39, %s4969_s18 }
  0x86   : > { %1297 = vrot.lane.b32.xlu0 %v5430_v61, %s4969_s18  ;;  %v4461_v61 = vpack.c.bf16 %v5539_v11, %v5539_v11 }
  0x87   : > { %v1244_v22 = vpop.permute.xlu1 %1243  ;;  %v1240_v44 = vpop.permute.xlu0 %1239 }
  0x88   : > { %1337 = vst.msk [vmem:[#allocation2 + $0x14] sm:$0xf] %vm1333_vm11, %v1244_v22  ;;  %1335 = vst.msk [vmem:[#allocation2 + $0xc] sm:$0xf] %vm1333_vm11, %v1240_v44 }
  0x89   : > { %1520 = vrot.lane.b32.xlu1 %v4460_v54, %s4971_s19 }
  0x8a   : > { %1518 = vrot.lane.b32.xlu0 %v4459_v32, %s4971_s19 }
  0x8b   : > { %v1248_v20 = vpop.permute.xlu1 %1247  ;;  %v1463_v38 = vpop.permute.xlu0 %1462 }
  0x8c   : > { %1339 = vst.msk [vmem:[#allocation2 + $0x1c] sm:$0xf] %vm1333_vm11, %v1248_v20 }
  0x8d   : > { %1559 = vst.msk [vmem:[#allocation2 + $0x8] sm:$0xf] %vm1558_vm9, %v1463_v38  ;;  %1524 = vrot.lane.b32.xlu1 %v4462_v58, %s4971_s19 }
  0x8e   : > { %1522 = vrot.lane.b32.xlu0 %v4461_v61, %s4971_s19 }
  0x8f   : > { %v1465_v30 = vpop.permute.xlu1 %1464  ;;  %v1467_v29 = vpop.permute.xlu0 %1466 }
  0x90   : > { %1560 = vst.msk [vmem:[#allocation2 + $0xc] sm:$0xf] %vm1558_vm9, %v1465_v30  ;;  %1561 = vst.msk [vmem:[#allocation2 + $0x10] sm:$0xf] %vm1558_vm9, %v1467_v29 }
  0x91   : > { %2533 = vrot.lane.b32.xlu1 %v4893_v4, %s4973_s28 }
  0x93   : > { %v1469_v11 = vpop.permute.xlu1 %1468  ;;  %v1246_v31 = vpop.permute.xlu0 %1245 }
  0x94   : > { %1562 = vst.msk [vmem:[#allocation2 + $0x14] sm:$0xf] %vm1558_vm9, %v1469_v11 }
  0x95   : > { %1338 = vst.msk [vmem:[#allocation2 + $0x18] sm:$0xf] %vm1333_vm11, %v1246_v31 }
  0x97   : > { %v1252_v9 = vpop.permute.xlu1 %1251  ;;  %v1250_v57 = vpop.permute.xlu0 %1249  ;;  %v4894_v19 = vld [vmem:[#allocation2 + $0x8] sm:$0xff]  }
  0x98   : > { %1341 = vst.msk [vmem:[#allocation2 + $0x24] sm:$0xf] %vm1333_vm11, %v1252_v9  ;;  %1340 = vst.msk [vmem:[#allocation2 + $0x20] sm:$0xf] %vm1333_vm11, %v1250_v57  ;;  %v4895_v14 = vld [vmem:[#allocation2 + $0x8] sm:$0xff]   ;;  %2284 = vrot.lane.b32.xlu0 %v4894_v19, %s4973_s28 }
  0x99   : > { %4601 = vmatprep.mubr.msk.bf16.mxu0 %vm1715_vm4, %v4895_v14  ;;  %4636 = vmatmul.mubr.msk.bf16.vlgmr.msra.gmra.mxu1 %vm1715_vm4, %v4895_v14 }
  0x9a   : > { %4702 = vmatpush3.bf16.msra.mxu1 %v2539_v5 }
  0x9b   : > { %v1473_v56 = vpop.permute.xlu1 %1472  ;;  %v1471_v16 = vpop.permute.xlu0 %1470  ;;  %v4896_v2 = vld [vmem:[#allocation2 + $0x10] sm:$0xff]   ;;  %4876 = vmatprep.subr.msk.bf16.mxu1 %vm1764_vm2, %v5883_v37 }
  0x9c   : > { %1564 = vst.msk [vmem:[#allocation2 + $0x1c] sm:$0xf] %vm1558_vm9, %v1473_v56  ;;  %1563 = vst.msk [vmem:[#allocation2 + $0x18] sm:$0xf] %vm1558_vm9, %v1471_v16  ;;  %v4897_v26 = vld [vmem:[#allocation2 + $0x10] sm:$0xff]   ;;  %2286 = vrot.lane.b32.xlu0 %v4896_v2, %s4973_s28 }
  0x9d   : > { %4602 = vmatmul.mubr.msk.bf16.vlgmr.msra.gmra.mxu0 %vm1715_vm4, %v4897_v26  ;;  %4639 = vmatprep.mubr.msk.bf16.mxu1 %vm1715_vm4, %v4897_v26 }
  0x9e   : > { %4668 = vmatpush3.bf16.msra.mxu0 %v2365_v48 }
  0x9f   : > { %v1477_v47 = vpop.permute.xlu1 %1476  ;;  %v1475_v62 = vpop.permute.xlu0 %1474  ;;  %4875 = vmatprep.subr.msk.bf16.mxu0 %vm1764_vm2, %v5878_v50 }
  0xa0   : > { %1566 = vst.msk [vmem:[#allocation2 + $0x24] sm:$0xf] %vm1558_vm9, %v1477_v47  ;;  %1565 = vst.msk [vmem:[#allocation2 + $0x20] sm:$0xf] %vm1558_vm9, %v1475_v62 }
  0xa3   : > { %v1256_v49 = vpop.permute.xlu1 %1255  ;;  %v1254_v24 = vpop.permute.xlu0 %1253  ;;  %v4898_v15 = vld [vmem:[#allocation2 + $0x18] sm:$0xff]  }
  0xa4   : > { %1343 = vst.msk [vmem:[#allocation2 + $0x2c] sm:$0xf] %vm1333_vm11, %v1256_v49  ;;  %1342 = vst.msk [vmem:[#allocation2 + $0x28] sm:$0xf] %vm1333_vm11, %v1254_v24  ;;  %v4899_v28 = vld [vmem:[#allocation2 + $0x18] sm:$0xff]   ;;  %2288 = vrot.lane.b32.xlu1 %v4898_v15, %s4973_s28 }
  0xa5   : > { %4605 = vmatprep.mubr.msk.bf16.mxu0 %vm1715_vm4, %v4899_v28  ;;  %4640 = vmatmul.mubr.msk.bf16.gmra.mxu1 %vm1715_vm4, %v4899_v28 }
  0xa7   : > { %v1260_v8 = vpop.permute.xlu1 %1259  ;;  %v1258_v35 = vpop.permute.xlu0 %1257  ;;  %v4900_v13 = vld [vmem:[#allocation2 + $0x20] sm:$0xff]  }
  0xa8   : > { %1345 = vst.msk [vmem:[#allocation2 + $0x34] sm:$0xf] %vm1333_vm11, %v1260_v8  ;;  %1344 = vst.msk [vmem:[#allocation2 + $0x30] sm:$0xf] %vm1333_vm11, %v1258_v35  ;;  %v4901_v18 = vld [vmem:[#allocation2 + $0x20] sm:$0xff]   ;;  %2290 = vrot.lane.b32.xlu0 %v4900_v13, %s4973_s28 }
  0xa9   : > { %4606 = vmatmul.mubr.msk.bf16.gmra.mxu0 %vm1715_vm4, %v4901_v18  ;;  %4643 = vmatprep.mubr.msk.bf16.mxu1 %vm1715_vm4, %v4901_v18 }
  0xab   : > { %v1481_v43 = vpop.permute.xlu1 %1480  ;;  %v1479_v34 = vpop.permute.xlu0 %1478 }
  0xac   : > { %1568 = vst.msk [vmem:[#allocation2 + $0x2c] sm:$0xf] %vm1558_vm9, %v1481_v43  ;;  %1567 = vst.msk [vmem:[#allocation2 + $0x28] sm:$0xf] %vm1558_vm9, %v1479_v34 }
  0xaf   : > { %v1485_v7 = vpop.permute.xlu1 %1484  ;;  %v1483_v52 = vpop.permute.xlu0 %1482 }
  0xb0   : > { %1570 = vst.msk [vmem:[#allocation2 + $0x34] sm:$0xf] %vm1558_vm9, %v1485_v7  ;;  %1569 = vst.msk [vmem:[#allocation2 + $0x30] sm:$0xf] %vm1558_vm9, %v1483_v52 }
  0xb3   : > { %v1264_v23 = vpop.permute.xlu1 %1263  ;;  %v1262_v45 = vpop.permute.xlu0 %1261  ;;  %v4902_v3 = vld [vmem:[#allocation2 + $0x28] sm:$0xff]  }
  0xb4   : > { %1347 = vst.msk [vmem:[#allocation2 + $0x3c] sm:$0xf] %vm1333_vm11, %v1264_v23  ;;  %1346 = vst.msk [vmem:[#allocation2 + $0x38] sm:$0xf] %vm1333_vm11, %v1262_v45  ;;  %v4903_v51 = vld [vmem:[#allocation2 + $0x28] sm:$0xff]   ;;  %2292 = vrot.lane.b32.xlu1 %v4902_v3, %s4973_s28  ;;  %v4924_v45 = vld [vmem:[#allocation2 + $0x10] sm:$0xff]  }
  0xb5   : > { %4609 = vmatprep.mubr.msk.bf16.mxu0 %vm1715_vm4, %v4903_v51  ;;  %4644 = vmatmul.mubr.msk.bf16.gmra.mxu1 %vm1715_vm4, %v4903_v51 }
  0xb7   : > { %v1268_v41 = vpop.permute.xlu1 %1267  ;;  %v1266_v27 = vpop.permute.xlu0 %1265  ;;  %v4904_v0 = vld [vmem:[#allocation2 + $0x30] sm:$0xff]  }
  0xb8   : > { %1349 = vst.msk [vmem:[#allocation2 + $0x44] sm:$0xf] %vm1333_vm11, %v1268_v41  ;;  %1348 = vst.msk [vmem:[#allocation2 + $0x40] sm:$0xf] %vm1333_vm11, %v1266_v27  ;;  %v4905_v36 = vld [vmem:[#allocation2 + $0x30] sm:$0xff]   ;;  %2294 = vrot.lane.b32.xlu0 %v4904_v0, %s4973_s28  ;;  %v4928_v41 = vld [vmem:[#allocation2 + $0x8] sm:$0xff]  }
  0xb9   : > { %4610 = vmatmul.mubr.msk.bf16.gmra.mxu0 %vm1715_vm4, %v4905_v36  ;;  %4647 = vmatprep.mubr.msk.bf16.mxu1 %vm1715_vm4, %v4905_v36  ;;  %v4927_v0 = vld [vmem:[#allocation2 + $0x18] sm:$0xff]   ;;  %v3106_v36 = vsel %vm1764_vm2, %v5883_v37, 0  ;;  %v2934_v37 = vsel %vm1764_vm2, %v5878_v50, 0 }
  0xbb   : > { %v1489_v55 = vpop.permute.xlu1 %1488  ;;  %v1487_v40 = vpop.permute.xlu0 %1486 }
  0xbc   : > { %1572 = vst.msk [vmem:[#allocation2 + $0x3c] sm:$0xf] %vm1558_vm9, %v1489_v55  ;;  %1571 = vst.msk [vmem:[#allocation2 + $0x38] sm:$0xf] %vm1558_vm9, %v1487_v40  ;;  %v5962_v55 = vld [vmem:[%s6491_s1 + $0x18] sm:$0xf] }
  0xbf   : > { %v1493_v10 = vpop.permute.xlu1 %1492  ;;  %v1491_v6 = vpop.permute.xlu0 %1490 }
  0xc0   : > { %1574 = vst.msk [vmem:[#allocation2 + $0x44] sm:$0xf] %vm1558_vm9, %v1493_v10  ;;  %1573 = vst.msk [vmem:[#allocation2 + $0x40] sm:$0xf] %vm1558_vm9, %v1491_v6  ;;  %v4929_v10 = vld [vmem:[#allocation2 + $0x28] sm:$0xff]   ;;  %v4930_v6 = vld [vmem:[#allocation2 + $0x20] sm:$0xff]  }
  0xc3   : > { %v1272_v33 = vpop.permute.xlu1 %1271  ;;  %v1270_v46 = vpop.permute.xlu0 %1269  ;;  %v4906_v42 = vld [vmem:[#allocation2 + $0x38] sm:$0xff]  }
  0xc4   : > { %1351 = vst.msk [vmem:[#allocation2 + $0x4c] sm:$0xf] %vm1333_vm11, %v1272_v33  ;;  %1350 = vst.msk [vmem:[#allocation2 + $0x48] sm:$0xf] %vm1333_vm11, %v1270_v46  ;;  %v4907_v25 = vld [vmem:[#allocation2 + $0x38] sm:$0xff]   ;;  %2296 = vrot.lane.b32.xlu1 %v4906_v42, %s4973_s28  ;;  %v4932_v42 = vld [vmem:[#allocation2 + $0x30] sm:$0xff]  }
  0xc5   : > { %4613 = vmatprep.mubr.msk.bf16.mxu0 %vm1715_vm4, %v4907_v25  ;;  %4648 = vmatmul.mubr.msk.bf16.gmra.mxu1 %vm1715_vm4, %v4907_v25  ;;  %v5975_v33 = vld [vmem:[%s6491_s1 + $0x1c] sm:$0xf] }
  0xc6   : > { %v4931_v46 = vld [vmem:[#allocation2 + $0x38] sm:$0xff]  }
  0xc7   : > { %v1276_v1 = vpop.permute.xlu1 %1275  ;;  %v1274_v53 = vpop.permute.xlu0 %1273  ;;  %v4908_v12 = vld [vmem:[#allocation2 + $0x40] sm:$0xff]  }
  0xc8   : > { %1353 = vst.msk [vmem:[#allocation2 + $0x54] sm:$0xf] %vm1333_vm11, %v1276_v1  ;;  %1352 = vst.msk [vmem:[#allocation2 + $0x50] sm:$0xf] %vm1333_vm11, %v1274_v53  ;;  %v4909_v59 = vld [vmem:[#allocation2 + $0x40] sm:$0xff]   ;;  %2298 = vrot.lane.b32.xlu0 %v4908_v12, %s4973_s28 }
  0xc9   : > { %4614 = vmatmul.mubr.msk.bf16.gmra.mxu0 %vm1715_vm4, %v4909_v59  ;;  %4651 = vmatprep.mubr.msk.bf16.mxu1 %vm1715_vm4, %v4909_v59  ;;  %v4934_v1 = vld [vmem:[#allocation2 + $0x40] sm:$0xff]  }
  0xcb   : > { %v1497_v21 = vpop.permute.xlu1 %1496  ;;  %v1495_v17 = vpop.permute.xlu0 %1494 }
  0xcc   : > { %1576 = vst.msk [vmem:[#allocation2 + $0x4c] sm:$0xf] %vm1558_vm9, %v1497_v21  ;;  %1575 = vst.msk [vmem:[#allocation2 + $0x48] sm:$0xf] %vm1558_vm9, %v1495_v17 }
  0xcf   : > { %v1501_v63 = vpop.permute.xlu1 %1500 }
  0xd0   : > { %v1499_v39 = vpop.permute.xlu0 %1498  ;;  %1578 = vst.msk [vmem:[#allocation2 + $0x54] sm:$0xf] %vm1558_vm9, %v1501_v63 }
  0xd1   : > { %1577 = vst.msk [vmem:[#allocation2 + $0x50] sm:$0xf] %vm1558_vm9, %v1499_v39 }
  0xd3   : > { %v1280_v54 = vpop.permute.xlu1 %1279  ;;  %v4910_v60 = vld [vmem:[#allocation2 + $0x48] sm:$0xff]  }
  0xd4   : > { %v1278_v32 = vpop.permute.xlu0 %1277  ;;  %1355 = vst.msk [vmem:[#allocation2 + $0x5c] sm:$0xf] %vm1333_vm11, %v1280_v54  ;;  %v4911_v22 = vld [vmem:[#allocation2 + $0x48] sm:$0xff]   ;;  %2300 = vrot.lane.b32.xlu1 %v4910_v60, %s4973_s28 }
  0xd5   : > { %1354 = vst.msk [vmem:[#allocation2 + $0x58] sm:$0xf] %vm1333_vm11, %v1278_v32  ;;  %4617 = vmatprep.mubr.msk.bf16.mxu0 %vm1715_vm4, %v4911_v22  ;;  %4652 = vmatmul.mubr.msk.bf16.gmra.mxu1 %vm1715_vm4, %v4911_v22  ;;  %v4933_v25 = vld [vmem:[#allocation2 + $0x48] sm:$0xff]  }
  0xd6   : > { %v4946_v54 = vld [vmem:[#allocation2 + $0x88] sm:$0xff]  }
  0xd7   : > { %v1284_v44 = vpop.permute.xlu1 %1283 }
  0xd8   : > { %v1282_v58 = vpop.permute.xlu0 %1281  ;;  %v4912_v61 = vld [vmem:[#allocation2 + $0x50] sm:$0xff]   ;;  %1357 = vst.msk [vmem:[#allocation2 + $0x64] sm:$0xf] %vm1333_vm11, %v1284_v44 }
  0xd9   : > { %1356 = vst.msk [vmem:[#allocation2 + $0x60] sm:$0xf] %vm1333_vm11, %v1282_v58  ;;  %v4913_v20 = vld [vmem:[#allocation2 + $0x50] sm:$0xff]   ;;  %2302 = vrot.lane.b32.xlu0 %v4912_v61, %s4973_s28 }
  0xda   : > { %4618 = vmatmul.mubr.msk.bf16.gmra.mxu0 %vm1715_vm4, %v4913_v20  ;;  %4655 = vmatprep.mubr.msk.bf16.mxu1 %vm1715_vm4, %v4913_v20  ;;  %v4936_v59 = vld [vmem:[#allocation2 + $0x50] sm:$0xff]  }
  0xdb   : > { %v1505_v38 = vpop.permute.xlu1 %1504 }
  0xdc   : > { %v1503_v4 = vpop.permute.xlu0 %1502  ;;  %1580 = vst.msk [vmem:[#allocation2 + $0x5c] sm:$0xf] %vm1558_vm9, %v1505_v38 }
  0xdd   : > { %1579 = vst.msk [vmem:[#allocation2 + $0x58] sm:$0xf] %vm1558_vm9, %v1503_v4 }
  0xdf   : > { %v1509_v30 = vpop.permute.xlu1 %1508 }
  0xe0   : > { %v1507_v29 = vpop.permute.xlu0 %1506  ;;  %1582 = vst.msk [vmem:[#allocation2 + $0x64] sm:$0xf] %vm1558_vm9, %v1509_v30 }
  0xe1   : > { %1581 = vst.msk [vmem:[#allocation2 + $0x60] sm:$0xf] %vm1558_vm9, %v1507_v29 }
  0xe3   : > { %v1288_v11 = vpop.permute.xlu1 %1287 }
  0xe4   : > { %v1286_v31 = vpop.permute.xlu0 %1285  ;;  %v4914_v9 = vld [vmem:[#allocation2 + $0x58] sm:$0xff]   ;;  %1359 = vst.msk [vmem:[#allocation2 + $0x6c] sm:$0xf] %vm1333_vm11, %v1288_v11  ;;  %v6016_v11 = vld [vmem:[%s6492_s2] ss:$0 sm:$0xff] }
  0xe5   : > { %1358 = vst.msk [vmem:[#allocation2 + $0x68] sm:$0xf] %vm1333_vm11, %v1286_v31  ;;  %v4915_v57 = vld [vmem:[#allocation2 + $0x58] sm:$0xff]   ;;  %2304 = vrot.lane.b32.xlu1 %v4914_v9, %s4973_s28 }
  0xe6   : > { %4621 = vmatprep.mubr.msk.bf16.mxu0 %vm1715_vm4, %v4915_v57  ;;  %4656 = vmatmul.mubr.msk.bf16.gmra.mxu1 %vm1715_vm4, %v4915_v57  ;;  %v4935_v12 = vld [vmem:[#allocation2 + $0x58] sm:$0xff]  }
  0xe7   : > { %v1292_v19 = vpop.permute.xlu1 %1291 }
  0xe8   : > { %v1290_v14 = vpop.permute.xlu0 %1289  ;;  %v4916_v5 = vld [vmem:[#allocation2 + $0x60] sm:$0xff]   ;;  %1361 = vst.msk [vmem:[#allocation2 + $0x74] sm:$0xf] %vm1333_vm11, %v1292_v19 }
  0xe9   : > { %1360 = vst.msk [vmem:[#allocation2 + $0x70] sm:$0xf] %vm1333_vm11, %v1290_v14  ;;  %v4917_v56 = vld [vmem:[#allocation2 + $0x60] sm:$0xff]   ;;  %2306 = vrot.lane.b32.xlu0 %v4916_v5, %s4973_s28 }
  0xea   : > { %4622 = vmatmul.mubr.msk.bf16.gmra.mxu0 %vm1715_vm4, %v4917_v56  ;;  %4659 = vmatprep.mubr.msk.bf16.mxu1 %vm1715_vm4, %v4917_v56  ;;  %v4938_v17 = vld [vmem:[#allocation2 + $0x60] sm:$0xff]  }
  0xeb   : > { %v1513_v16 = vpop.permute.xlu1 %1512 }
  0xec   : > { %v1511_v2 = vpop.permute.xlu0 %1510  ;;  %1584 = vst.msk [vmem:[#allocation2 + $0x6c] sm:$0xf] %vm1558_vm9, %v1513_v16 }
  0xed   : > { %1583 = vst.msk [vmem:[#allocation2 + $0x68] sm:$0xf] %vm1558_vm9, %v1511_v2 }
  0xef   : > { %v1517_v26 = vpop.permute.xlu1 %1516 }
  0xf0   : > { %v1515_v48 = vpop.permute.xlu0 %1514  ;;  %1586 = vst.msk [vmem:[#allocation2 + $0x74] sm:$0xf] %vm1558_vm9, %v1517_v26 }
  0xf1   : > { %1585 = vst.msk [vmem:[#allocation2 + $0x70] sm:$0xf] %vm1558_vm9, %v1515_v48 }
  0xf3   : > { %v1296_v47 = vpop.permute.xlu1 %1295 }
  0xf4   : > { %v1294_v62 = vpop.permute.xlu0 %1293  ;;  %v4918_v49 = vld [vmem:[#allocation2 + $0x68] sm:$0xff]   ;;  %1363 = vst.msk [vmem:[#allocation2 + $0x7c] sm:$0xf] %vm1333_vm11, %v1296_v47 }
  0xf5   : > { %1362 = vst.msk [vmem:[#allocation2 + $0x78] sm:$0xf] %vm1333_vm11, %v1294_v62  ;;  %v4919_v24 = vld [vmem:[#allocation2 + $0x68] sm:$0xff]   ;;  %2308 = vrot.lane.b32.xlu1 %v4918_v49, %s4973_s28 }
  0xf6   : > { %4625 = vmatprep.mubr.msk.bf16.mxu0 %vm1715_vm4, %v4919_v24  ;;  %4660 = vmatmul.mubr.msk.bf16.gmra.mxu1 %vm1715_vm4, %v4919_v24  ;;  %v4937_v21 = vld [vmem:[#allocation2 + $0x68] sm:$0xff]  }
  0xf7   : > { %v1300_v15 = vpop.permute.xlu1 %1299 }
  0xf8   : > { %v1298_v28 = vpop.permute.xlu0 %1297  ;;  %v4920_v8 = vld [vmem:[#allocation2 + $0x70] sm:$0xff]   ;;  %1365 = vst.msk [vmem:[#allocation2 + $0x84] sm:$0xf] %vm1333_vm11, %v1300_v15 }
  0xf9   : > { %1364 = vst.msk [vmem:[#allocation2 + $0x80] sm:$0xf] %vm1333_vm11, %v1298_v28  ;;  %v4921_v35 = vld [vmem:[#allocation2 + $0x70] sm:$0xff]   ;;  %2310 = vrot.lane.b32.xlu0 %v4920_v8, %s4973_s28 }
  0xfa   : > { %4626 = vmatmul.mubr.msk.bf16.gmra.mxu0 %vm1715_vm4, %v4921_v35  ;;  %4663 = vmatprep.mubr.msk.bf16.mxu1 %vm1715_vm4, %v4921_v35  ;;  %v4940_v39 = vld [vmem:[#allocation2 + $0x70] sm:$0xff]  }
  0xfb   : > { %v1521_v13 = vpop.permute.xlu1 %1520 }
  0xfc   : > { %v1519_v18 = vpop.permute.xlu0 %1518  ;;  %1588 = vst.msk [vmem:[#allocation2 + $0x7c] sm:$0xf] %vm1558_vm9, %v1521_v13 }
  0xfd   : > { %1587 = vst.msk [vmem:[#allocation2 + $0x78] sm:$0xf] %vm1558_vm9, %v1519_v18 }
  0xff   : > { %v1525_v43 = vpop.permute.xlu1 %1524 }
 0x100   : > { %v1523_v34 = vpop.permute.xlu0 %1522  ;;  %1590 = vst.msk [vmem:[#allocation2 + $0x84] sm:$0xf] %vm1558_vm9, %v1525_v43 }
 0x101   : > { %1589 = vst.msk [vmem:[#allocation2 + $0x80] sm:$0xf] %vm1558_vm9, %v1523_v34 }
 0x103   : > { %v2534_v23 = vpop.permute.xlu1 %2533 }
 0x104   : > { %v4922_v7 = vld [vmem:[#allocation2 + $0x78] sm:$0xff]  }
 0x105   : > { %v4923_v52 = vld [vmem:[#allocation2 + $0x78] sm:$0xff]   ;;  %2312 = vrot.lane.b32.xlu1 %v4922_v7, %s4973_s28 }
 0x106   : > { %4629 = vmatprep.mubr.msk.bf16.mxu0 %vm1715_vm4, %v4923_v52  ;;  %4664 = vmatmul.mubr.msk.bf16.gmra.mxu1 %vm1715_vm4, %v4923_v52  ;;  %v4939_v63 = vld [vmem:[#allocation2 + $0x78] sm:$0xff]  }
 0x107   : > { %4703 = vmatprep.mubr.msk.bf16.mxu1 %vm1715_vm4, %v2534_v23 }
 0x108   : > { %v4925_v3 = vld [vmem:[#allocation2 + $0x80] sm:$0xff]  }
 0x109   : > { %v4926_v51 = vld [vmem:[#allocation2 + $0x80] sm:$0xff]   ;;  %3452 = vrot.lane.b32.xlu1 %v4924_v45, %s4973_s28  ;;  %2314 = vrot.lane.b32.xlu0 %v4925_v3, %s4973_s28 }
 0x10a   : > { %4630 = vmatmul.mubr.msk.bf16.gmra.mxu0 %vm1715_vm4, %v4926_v51  ;;  %v2285_v27 = vpop.permute.xlu0 %2284  ;;  %v4941_v60 = vld [vmem:[#allocation2 + $0x80] sm:$0xff]  }
 0x10b   : > { %4669 = vmatprep.mubr.msk.bf16.mxu0 %vm1715_vm4, %v2285_v27 }
 0x10d   : > { %3454 = vrot.lane.b32.xlu1 %v4927_v0, %s4973_s28  ;;  %3701 = vrot.lane.b32.xlu0 %v4928_v41, %s4973_s28 }
 0x10e   : > { %4704 = vmatmul.mubr.msk.bf16.vlgmr.msra.gmra.mxu1 %vm1715_vm4, %v2285_v27  ;;  %v2287_v40 = vpop.permute.xlu0 %2286 }
 0x10f   : > { %4770 = vmatpush3.bf16.msra.mxu1 %v3106_v36  ;;  %4707 = vmatprep.mubr.msk.bf16.mxu1 %vm1715_vm4, %v2287_v40 }
 0x110   : > { %4878 = vmatprep.subr.msk.bf16.mxu1 %vm1764_vm2, %v5962_v55 }
 0x111   : > { %3458 = vrot.lane.b32.xlu1 %v4929_v10, %s4973_s28  ;;  %3456 = vrot.lane.b32.xlu0 %v4930_v6, %s4973_s28  ;;  %v4942_v10 = vld [vmem:[#allocation2 + $0x8] sm:$0xff]  }
 0x112   : > { %4670 = vmatmul.mubr.msk.bf16.vlgmr.msra.gmra.mxu0 %vm1715_vm4, %v2287_v40 }
 0x113   : > { %4736 = vmatpush3.bf16.msra.mxu0 %v2934_v37 }
 0x114   : > { %4877 = vmatprep.subr.msk.bf16.mxu0 %vm1764_vm2, %v5975_v33 }
 0x115   : > { %3462 = vrot.lane.b32.xlu1 %v4931_v46, %s4973_s28  ;;  %3460 = vrot.lane.b32.xlu0 %v4932_v42, %s4973_s28 }
 0x116   : > { %v2289_v50 = vpop.permute.xlu1 %2288 }
 0x117   : > { %4673 = vmatprep.mubr.msk.bf16.mxu0 %vm1715_vm4, %v2289_v50  ;;  %4708 = vmatmul.mubr.msk.bf16.gmra.mxu1 %vm1715_vm4, %v2289_v50  ;;  %v4943_v50 = vld [vmem:[#allocation2 + $0x10] sm:$0xff]  }
 0x119   : > { %3466 = vrot.lane.b32.xlu1 %v4933_v25, %s4973_s28  ;;  %3464 = vrot.lane.b32.xlu0 %v4934_v1, %s4973_s28 }
 0x11a   : > { %v2291_v53 = vpop.permute.xlu0 %2290 }
 0x11b   : > { %4674 = vmatmul.mubr.msk.bf16.gmra.mxu0 %vm1715_vm4, %v2291_v53  ;;  %4711 = vmatprep.mubr.msk.bf16.mxu1 %vm1715_vm4, %v2291_v53 }
 0x11d   : > { %3470 = vrot.lane.b32.xlu1 %v4935_v12, %s4973_s28  ;;  %3468 = vrot.lane.b32.xlu0 %v4936_v59, %s4973_s28 }
 0x121   : > { %3474 = vrot.lane.b32.xlu1 %v4937_v21, %s4973_s28  ;;  %3472 = vrot.lane.b32.xlu0 %v4938_v17, %s4973_s28  ;;  %v3707_v21 = vsel %vm1764_vm2, %v5962_v55, 0  ;;  %v3533_v55 = vsel %vm1764_vm2, %v5975_v33, 0 }
 0x125   : > { %3478 = vrot.lane.b32.xlu1 %v4939_v63, %s4973_s28  ;;  %3476 = vrot.lane.b32.xlu0 %v4940_v39, %s4973_s28  ;;  %v4944_v39 = vld [vmem:[#allocation2 + $0x18] sm:$0xff]  }
 0x126   : > { %v2293_v32 = vpop.permute.xlu1 %2292 }
 0x127   : > { %4677 = vmatprep.mubr.msk.bf16.mxu0 %vm1715_vm4, %v2293_v32  ;;  %4712 = vmatmul.mubr.msk.bf16.gmra.mxu1 %vm1715_vm4, %v2293_v32 }
 0x129   : > { %3480 = vrot.lane.b32.xlu0 %v4941_v60, %s4973_s28  ;;  %3482 = vrot.lane.b32.xlu1 %v4946_v54, %s4973_s28 }
 0x12a   : > { %v2295_v22 = vpop.permute.xlu0 %2294 }
 0x12b   : > { %4678 = vmatmul.mubr.msk.bf16.gmra.mxu0 %vm1715_vm4, %v2295_v22  ;;  %4715 = vmatprep.mubr.msk.bf16.mxu1 %vm1715_vm4, %v2295_v22 }
 0x136   : > { %v2297_v44 = vpop.permute.xlu1 %2296 }
 0x137   : > { %4681 = vmatprep.mubr.msk.bf16.mxu0 %vm1715_vm4, %v2297_v44  ;;  %4716 = vmatmul.mubr.msk.bf16.gmra.mxu1 %vm1715_vm4, %v2297_v44 }
 0x13a   : > { %v2299_v58 = vpop.permute.xlu0 %2298 }
 0x13b   : > { %4682 = vmatmul.mubr.msk.bf16.gmra.mxu0 %vm1715_vm4, %v2299_v58  ;;  %4719 = vmatprep.mubr.msk.bf16.mxu1 %vm1715_vm4, %v2299_v58  ;;  %v4945_v58 = vld [vmem:[#allocation2 + $0x20] sm:$0xff]  }
 0x146   : > { %v2301_v61 = vpop.permute.xlu1 %2300 }
 0x147   : > { %4685 = vmatprep.mubr.msk.bf16.mxu0 %vm1715_vm4, %v2301_v61  ;;  %4720 = vmatmul.mubr.msk.bf16.gmra.mxu1 %vm1715_vm4, %v2301_v61 }
 0x14b   : > { %v2303_v20 = vpop.permute.xlu0 %2302 }
 0x14c   : > { %4686 = vmatmul.mubr.msk.bf16.gmra.mxu0 %vm1715_vm4, %v2303_v20  ;;  %4723 = vmatprep.mubr.msk.bf16.mxu1 %vm1715_vm4, %v2303_v20  ;;  %v4947_v20 = vld [vmem:[#allocation2 + $0x28] sm:$0xff]  }
 0x157   : > { %v2305_v38 = vpop.permute.xlu1 %2304 }
 0x158   : > { %4689 = vmatprep.mubr.msk.bf16.mxu0 %vm1715_vm4, %v2305_v38  ;;  %4724 = vmatmul.mubr.msk.bf16.gmra.mxu1 %vm1715_vm4, %v2305_v38 }
 0x159   : > { %v4637_v4 = vpop.f32.mrf.mxu1 }
 0x15b   : > { %v2307_v30 = vpop.permute.xlu0 %2306  ;;  %v1974_v29 = vpop.f32.mrf.mxu1 }
 0x15c   : > { %4690 = vmatmul.mubr.msk.bf16.gmra.mxu0 %vm1715_vm4, %v2307_v30  ;;  %4727 = vmatprep.mubr.msk.bf16.mxu1 %vm1715_vm4, %v2307_v30  ;;  %v4948_v30 = vld [vmem:[#allocation2 + $0x30] sm:$0xff]  }
 0x15d   : > { %v4603_v31 = vpop.f32.mrf.mxu0  ;;  %v4638_v57 = vpop.f32.mrf.mxu1 }
 0x15e   : > { %v1983_v9 = vadd.f32 %v4637_v4, %v4603_v31 }
 0x15f   : > { %v1802_v19 = vpop.f32.mrf.mxu0  ;;  %v1977_v26 = vpop.f32.mrf.mxu1 }
 0x160   : > { %v2103_v14 = vadd.f32 %v6016_v11, %v1983_v9  ;;  %v1975_v5 = vadd.f32 %v1974_v29, %v1802_v19 }
 0x161   : > { %v4604_v56 = vpop.f32.mrf.mxu0 }
 0x162   : > { %2136 = vst.msk [vmem:[%s6021_s17 + $0x10] sm:$0xff] %vm2133_vm10, %v2103_v14  ;;  %v2101_v16 = vadd.f32 %v6016_v11, %v1975_v5  ;;  %v1986_v2 = vadd.f32 %v4638_v57, %v4604_v56  ;;  %v4949_v56 = vld [vmem:[#allocation2 + $0x38] sm:$0xff]  }
 0x163   : > { %v1805_v48 = vpop.f32.mrf.mxu0 }
 0x164   : > { %2134 = vst.msk [vmem:[%s6021_s17] sm:$0xff] %vm2133_vm10, %v2101_v16  ;;  %v2104_v47 = vadd.f32 %v6016_v11, %v1986_v2  ;;  %v1978_v62 = vadd.f32 %v1977_v26, %v1805_v48 }
 0x165   : > { %v4641_v49 = vpop.f32.mrf.mxu1 }
 0x166   : > { %2137 = vst.msk [vmem:[%s6021_s17 + $0x18] sm:$0xff] %vm2133_vm10, %v2104_v47  ;;  %v2102_v24 = vadd.f32 %v6016_v11, %v1978_v62  ;;  %v4950_v62 = vld [vmem:[#allocation2 + $0x40] sm:$0xff]  }
 0x167   : > { %v2309_v15 = vpop.permute.xlu1 %2308  ;;  %v1990_v28 = vpop.f32.mrf.mxu1 }
 0x168   : > { %4693 = vmatprep.mubr.msk.bf16.mxu0 %vm1715_vm4, %v2309_v15  ;;  %4728 = vmatmul.mubr.msk.bf16.gmra.mxu1 %vm1715_vm4, %v2309_v15  ;;  %2135 = vst.msk [vmem:[%s6021_s17 + $0x8] sm:$0xff] %vm2133_vm10, %v2102_v24  ;;  %v4951_v24 = vld [vmem:[#allocation2 + $0x48] sm:$0xff]  }
 0x169   : > { %v4607_v8 = vpop.f32.mrf.mxu0  ;;  %v4642_v18 = vpop.f32.mrf.mxu1 }
 0x16a   : > { %v1999_v35 = vadd.f32 %v4641_v49, %v4607_v8 }
 0x16b   : > { %v2311_v13 = vpop.permute.xlu0 %2310  ;;  %v1818_v43 = vpop.f32.mrf.mxu0 }
 0x16c   : > { %4694 = vmatmul.mubr.msk.bf16.gmra.mxu0 %vm1715_vm4, %v2311_v13  ;;  %4731 = vmatprep.mubr.msk.bf16.mxu1 %vm1715_vm4, %v2311_v13  ;;  %v2107_v34 = vadd.f32 %v6016_v11, %v1999_v35  ;;  %v1991_v7 = vadd.f32 %v1990_v28, %v1818_v43  ;;  %v1993_v3 = vpop.f32.mrf.mxu1  ;;  %v4952_v35 = vld [vmem:[#allocation2 + $0x50] sm:$0xff]  }
 0x16d   : > { %v4608_v52 = vpop.f32.mrf.mxu0 }
 0x16e   : > { %2140 = vst.msk [vmem:[%s6021_s17 + $0x30] sm:$0xff] %vm2133_vm10, %v2107_v34  ;;  %v2105_v23 = vadd.f32 %v6016_v11, %v1991_v7  ;;  %v2002_v45 = vadd.f32 %v4642_v18, %v4608_v52 }
 0x16f   : > { %v1821_v51 = vpop.f32.mrf.mxu0 }
 0x170   : > { %2138 = vst.msk [vmem:[%s6021_s17 + $0x20] sm:$0xff] %vm2133_vm10, %v2105_v23  ;;  %v2108_v41 = vadd.f32 %v6016_v11, %v2002_v45  ;;  %v1994_v27 = vadd.f32 %v1993_v3, %v1821_v51  ;;  %v4953_v45 = vld [vmem:[#allocation2 + $0x58] sm:$0xff]  }
 0x172   : > { %2141 = vst.msk [vmem:[%s6021_s17 + $0x38] sm:$0xff] %vm2133_vm10, %v2108_v41  ;;  %v2106_v0 = vadd.f32 %v6016_v11, %v1994_v27 }
 0x174   : > { %2139 = vst.msk [vmem:[%s6021_s17 + $0x28] sm:$0xff] %vm2133_vm10, %v2106_v0 }
 0x175   : > { %v4645_v36 = vpop.f32.mrf.mxu1 }
 0x177   : > { %v2313_v40 = vpop.permute.xlu1 %2312  ;;  %v2006_v6 = vpop.f32.mrf.mxu1 }
 0x178   : > { %4697 = vmatprep.mubr.msk.bf16.mxu0 %vm1715_vm4, %v2313_v40  ;;  %4732 = vmatmul.mubr.msk.bf16.gmra.mxu1 %vm1715_vm4, %v2313_v40 }
 0x179   : > { %4771 = vmatprep.mubr.msk.bf16.mxu1 %vm1715_vm4, %v4942_v10  ;;  %v4611_v37 = vpop.f32.mrf.mxu0  ;;  %v4646_v25 = vpop.f32.mrf.mxu1  ;;  %v4955_v10 = vld [vmem:[#allocation2 + $0x68] sm:$0xff]  }
 0x17a   : > { %v2015_v46 = vadd.f32 %v4645_v36, %v4611_v37  ;;  %v4954_v36 = vld [vmem:[#allocation2 + $0x60] sm:$0xff]  }
 0x17b   : > { %v2315_v42 = vpop.permute.xlu0 %2314  ;;  %v1834_v1 = vpop.f32.mrf.mxu0 }
 0x17c   : > { %4698 = vmatmul.mubr.msk.bf16.gmra.mxu0 %vm1715_vm4, %v2315_v42  ;;  %v2111_v53 = vadd.f32 %v6016_v11, %v2015_v46  ;;  %v2007_v12 = vadd.f32 %v2006_v6, %v1834_v1  ;;  %v2009_v54 = vpop.f32.mrf.mxu1  ;;  %v4956_v42 = vld [vmem:[#allocation2 + $0x70] sm:$0xff]  }
 0x17d   : > { %4737 = vmatprep.mubr.msk.bf16.mxu0 %vm1715_vm4, %v4943_v50  ;;  %v4612_v59 = vpop.f32.mrf.mxu0 }
 0x17e   : > { %2144 = vst.msk [vmem:[%s6021_s17 + $0x50] sm:$0xff] %vm2133_vm10, %v2111_v53  ;;  %v2109_v17 = vadd.f32 %v6016_v11, %v2007_v12  ;;  %v2018_v63 = vadd.f32 %v4646_v25, %v4612_v59 }
 0x17f   : > { %v1837_v32 = vpop.f32.mrf.mxu0 }
 0x180   : > { %4772 = vmatmul.mubr.msk.bf16.vlgmr.msra.gmra.mxu1 %vm1715_vm4, %v4943_v50  ;;  %2142 = vst.msk [vmem:[%s6021_s17 + $0x40] sm:$0xff] %vm2133_vm10, %v2109_v17  ;;  %v2112_v60 = vadd.f32 %v6016_v11, %v2018_v63  ;;  %v2010_v22 = vadd.f32 %v2009_v54, %v1837_v32  ;;  %v4957_v17 = vld [vmem:[#allocation2 + $0x78] sm:$0xff]  }
 0x181   : > { %4775 = vmatprep.mubr.msk.bf16.mxu1 %vm1715_vm4, %v4944_v39  ;;  %4838 = vmatpush3.bf16.msra.mxu1 %v3707_v21 }
 0x182   : > { %2145 = vst.msk [vmem:[%s6021_s17 + $0x58] sm:$0xff] %vm2133_vm10, %v2112_v60  ;;  %v2110_v44 = vadd.f32 %v6016_v11, %v2010_v22  ;;  %v4958_v22 = vld [vmem:[#allocation2 + $0x80] sm:$0xff]  }
 0x184   : > { %4738 = vmatmul.mubr.msk.bf16.vlgmr.msra.gmra.mxu0 %vm1715_vm4, %v4944_v39  ;;  %2143 = vst.msk [vmem:[%s6021_s17 + $0x48] sm:$0xff] %vm2133_vm10, %v2110_v44  ;;  %v3702_v44 = vpop.permute.xlu0 %3701 }
 0x185   : > { %4804 = vmatpush3.bf16.msra.mxu0 %v3533_v55  ;;  %4741 = vmatprep.mubr.msk.bf16.mxu0 %vm1715_vm4, %v4945_v58  ;;  %v4649_v61 = vpop.f32.mrf.mxu1 }
 0x187   : > { %v2022_v38 = vpop.f32.mrf.mxu1 }
 0x188   : > { %4776 = vmatmul.mubr.msk.bf16.gmra.mxu1 %vm1715_vm4, %v4945_v58 }
 0x189   : > { %4779 = vmatprep.mubr.msk.bf16.mxu1 %vm1715_vm4, %v4947_v20  ;;  %v4615_v33 = vpop.f32.mrf.mxu0  ;;  %v4650_v29 = vpop.f32.mrf.mxu1 }
 0x18a   : > { %v2031_v4 = vadd.f32 %v4649_v61, %v4615_v33  ;;  %v4959_v61 = vld [vmem:[#allocation2 + $0x88] sm:$0xff]  }
 0x18b   : > { %v1850_v31 = vpop.f32.mrf.mxu0  ;;  %v2025_v16 = vpop.f32.mrf.mxu1 }
 0x18c   : > { %4742 = vmatmul.mubr.msk.bf16.gmra.mxu0 %vm1715_vm4, %v4947_v20  ;;  %v2115_v9 = vadd.f32 %v6016_v11, %v2031_v4  ;;  %v2023_v57 = vadd.f32 %v2022_v38, %v1850_v31  ;;  %v3453_v20 = vpop.permute.xlu1 %3452 }
 0x18d   : > { %4745 = vmatprep.mubr.msk.bf16.mxu0 %vm1715_vm4, %v4948_v30  ;;  %v4616_v19 = vpop.f32.mrf.mxu0 }
 0x18e   : > { %2148 = vst.msk [vmem:[%s6021_s17 + $0x70] sm:$0xff] %vm2133_vm10, %v2115_v9  ;;  %v2113_v14 = vadd.f32 %v6016_v11, %v2023_v57  ;;  %v2034_v5 = vadd.f32 %v4650_v29, %v4616_v19 }
 0x18f   : > { %v1853_v2 = vpop.f32.mrf.mxu0 }
 0x190   : > { %4780 = vmatmul.mubr.msk.bf16.gmra.mxu1 %vm1715_vm4, %v4948_v30  ;;  %2146 = vst.msk [vmem:[%s6021_s17 + $0x60] sm:$0xff] %vm2133_vm10, %v2113_v14  ;;  %v2116_v26 = vadd.f32 %v6016_v11, %v2034_v5  ;;  %v2026_v48 = vadd.f32 %v2025_v16, %v1853_v2  ;;  %v3455_v57 = vpop.permute.xlu1 %3454 }
 0x191   : > { %4783 = vmatprep.mubr.msk.bf16.mxu1 %vm1715_vm4, %v4949_v56 }
 0x192   : > { %2149 = vst.msk [vmem:[%s6021_s17 + $0x78] sm:$0xff] %vm2133_vm10, %v2116_v26  ;;  %v2114_v47 = vadd.f32 %v6016_v11, %v2026_v48  ;;  %v3457_v48 = vpop.permute.xlu0 %3456 }
 0x194   : > { %4746 = vmatmul.mubr.msk.bf16.gmra.mxu0 %vm1715_vm4, %v4949_v56  ;;  %2147 = vst.msk [vmem:[%s6021_s17 + $0x68] sm:$0xff] %vm2133_vm10, %v2114_v47 }
 0x195   : > { %4749 = vmatprep.mubr.msk.bf16.mxu0 %vm1715_vm4, %v4950_v62  ;;  %v4653_v49 = vpop.f32.mrf.mxu1 }
 0x197   : > { %v2038_v15 = vpop.f32.mrf.mxu1 }
 0x198   : > { %4784 = vmatmul.mubr.msk.bf16.gmra.mxu1 %vm1715_vm4, %v4950_v62  ;;  %v3459_v62 = vpop.permute.xlu1 %3458 }
 0x199   : > { %4787 = vmatprep.mubr.msk.bf16.mxu1 %vm1715_vm4, %v4951_v24  ;;  %v4654_v13 = vpop.f32.mrf.mxu1 }
 0x19a   : > { %v4619_v28 = vpop.f32.mrf.mxu0 }
 0x19b   : > { %v2047_v8 = vadd.f32 %v4653_v49, %v4619_v28  ;;  %v2041_v3 = vpop.f32.mrf.mxu1  ;;  %v3461_v28 = vpop.permute.xlu0 %3460 }
 0x19c   : > { %v1866_v18 = vpop.f32.mrf.mxu0  ;;  %4750 = vmatmul.mubr.msk.bf16.gmra.mxu0 %vm1715_vm4, %v4951_v24 }
 0x19d   : > { %v2119_v43 = vadd.f32 %v6016_v11, %v2047_v8  ;;  %v2039_v34 = vadd.f32 %v2038_v15, %v1866_v18  ;;  %4753 = vmatprep.mubr.msk.bf16.mxu0 %vm1715_vm4, %v4952_v35 }
 0x19e   : > { %v4620_v7 = vpop.f32.mrf.mxu0 }
 0x19f   : > { %2152 = vst.msk [vmem:[%s6021_s17 + $0x90] sm:$0xff] %vm2133_vm10, %v2119_v43  ;;  %v2117_v52 = vadd.f32 %v6016_v11, %v2039_v34  ;;  %v2050_v23 = vadd.f32 %v4654_v13, %v4620_v7 }
 0x1a0   : > { %v1869_v51 = vpop.f32.mrf.mxu0  ;;  %4788 = vmatmul.mubr.msk.bf16.gmra.mxu1 %vm1715_vm4, %v4952_v35 }
 0x1a1   : > { %2150 = vst.msk [vmem:[%s6021_s17 + $0x80] sm:$0xff] %vm2133_vm10, %v2117_v52  ;;  %v2120_v41 = vadd.f32 %v6016_v11, %v2050_v23  ;;  %v2042_v27 = vadd.f32 %v2041_v3, %v1869_v51  ;;  %4791 = vmatprep.mubr.msk.bf16.mxu1 %vm1715_vm4, %v4953_v45  ;;  %v3463_v52 = vpop.permute.xlu1 %3462 }
 0x1a3   : > { %2153 = vst.msk [vmem:[%s6021_s17 + $0x98] sm:$0xff] %vm2133_vm10, %v2120_v41  ;;  %v2118_v0 = vadd.f32 %v6016_v11, %v2042_v27 }
 0x1a4   : > { %4754 = vmatmul.mubr.msk.bf16.gmra.mxu0 %vm1715_vm4, %v4953_v45 }
 0x1a5   : > { %2151 = vst.msk [vmem:[%s6021_s17 + $0x88] sm:$0xff] %vm2133_vm10, %v2118_v0  ;;  %4757 = vmatprep.mubr.msk.bf16.mxu0 %vm1715_vm4, %v4954_v36 }
 0x1a6   : > { %v4657_v40 = vpop.f32.mrf.mxu1 }
 0x1a8   : > { %v2054_v6 = vpop.f32.mrf.mxu1  ;;  %4792 = vmatmul.mubr.msk.bf16.gmra.mxu1 %vm1715_vm4, %v4954_v36 }
 0x1a9   : > { %4795 = vmatprep.mubr.msk.bf16.mxu1 %vm1715_vm4, %v4955_v10 }
 0x1aa   : > { %v4623_v37 = vpop.f32.mrf.mxu0  ;;  %v4658_v50 = vpop.f32.mrf.mxu1 }
 0x1ab   : > { %v2063_v46 = vadd.f32 %v4657_v40, %v4623_v37 }
 0x1ac   : > { %v1882_v25 = vpop.f32.mrf.mxu0  ;;  %4758 = vmatmul.mubr.msk.bf16.gmra.mxu0 %vm1715_vm4, %v4955_v10  ;;  %v2057_v63 = vpop.f32.mrf.mxu1 }
 0x1ad   : > { %v2123_v1 = vadd.f32 %v6016_v11, %v2063_v46  ;;  %v2055_v53 = vadd.f32 %v2054_v6, %v1882_v25  ;;  %4761 = vmatprep.mubr.msk.bf16.mxu0 %vm1715_vm4, %v4956_v42  ;;  %v3465_v6 = vpop.permute.xlu0 %3464 }
 0x1ae   : > { %v4624_v12 = vpop.f32.mrf.mxu0 }
 0x1af   : > { %2156 = vst.msk [vmem:[%s6021_s17 + $0xb0] sm:$0xff] %vm2133_vm10, %v2123_v1  ;;  %v2121_v59 = vadd.f32 %v6016_v11, %v2055_v53  ;;  %v2066_v21 = vadd.f32 %v4658_v50, %v4624_v12  ;;  %v3467_v1 = vpop.permute.xlu1 %3466 }
 0x1b0   : > { %v1885_v39 = vpop.f32.mrf.mxu0  ;;  %4796 = vmatmul.mubr.msk.bf16.gmra.mxu1 %vm1715_vm4, %v4956_v42 }
 0x1b1   : > { %2154 = vst.msk [vmem:[%s6021_s17 + $0xa0] sm:$0xff] %vm2133_vm10, %v2121_v59  ;;  %v2124_v54 = vadd.f32 %v6016_v11, %v2066_v21  ;;  %v2058_v32 = vadd.f32 %v2057_v63, %v1885_v39  ;;  %4799 = vmatprep.mubr.msk.bf16.mxu1 %vm1715_vm4, %v4957_v17 }
 0x1b3   : > { %2157 = vst.msk [vmem:[%s6021_s17 + $0xb8] sm:$0xff] %vm2133_vm10, %v2124_v54  ;;  %v2122_v60 = vadd.f32 %v6016_v11, %v2058_v32  ;;  %v3469_v32 = vpop.permute.xlu0 %3468 }
 0x1b4   : > { %4762 = vmatmul.mubr.msk.bf16.gmra.mxu0 %vm1715_vm4, %v4957_v17 }
 0x1b5   : > { %2155 = vst.msk [vmem:[%s6021_s17 + $0xa8] sm:$0xff] %vm2133_vm10, %v2122_v60  ;;  %4765 = vmatprep.mubr.msk.bf16.mxu0 %vm1715_vm4, %v4958_v22 }
 0x1b6   : > { %v4661_v55 = vpop.f32.mrf.mxu1 }
 0x1b8   : > { %v2070_v58 = vpop.f32.mrf.mxu1  ;;  %4800 = vmatmul.mubr.msk.bf16.gmra.mxu1 %vm1715_vm4, %v4958_v22 }
 0x1b9   : > { %4839 = vmatprep.mubr.msk.bf16.mxu1 %vm1715_vm4, %v3702_v44 }
 0x1ba   : > { %v4627_v38 = vpop.f32.mrf.mxu0  ;;  %v4662_v4 = vpop.f32.mrf.mxu1 }
 0x1bb   : > { %v2079_v33 = vadd.f32 %v4661_v55, %v4627_v38 }
 0x1bc   : > { %v1898_v30 = vpop.f32.mrf.mxu0  ;;  %4766 = vmatmul.mubr.msk.bf16.gmra.mxu0 %vm1715_vm4, %v4959_v61  ;;  %v2073_v5 = vpop.f32.mrf.mxu1 }
 0x1bd   : > { %v2127_v29 = vadd.f32 %v6016_v11, %v2079_v33  ;;  %v2071_v31 = vadd.f32 %v2070_v58, %v1898_v30  ;;  %4805 = vmatprep.mubr.msk.bf16.mxu0 %vm1715_vm4, %v3453_v20 }
 0x1be   : > { %v4628_v9 = vpop.f32.mrf.mxu0 }
 0x1bf   : > { %2160 = vst.msk [vmem:[%s6021_s17 + $0xd0] sm:$0xff] %vm2133_vm10, %v2127_v29  ;;  %v2125_v19 = vadd.f32 %v6016_v11, %v2071_v31  ;;  %v2082_v14 = vadd.f32 %v4662_v4, %v4628_v9 }
 0x1c0   : > { %v1901_v56 = vpop.f32.mrf.mxu0  ;;  %4840 = vmatmul.mubr.msk.bf16.vlgmr.msra.gmra.mxu1 %vm1715_vm4, %v3453_v20  ;;  %v3471_v20 = vpop.permute.xlu1 %3470 }
 0x1c1   : > { %2158 = vst.msk [vmem:[%s6021_s17 + $0xc0] sm:$0xff] %vm2133_vm10, %v2125_v19  ;;  %v2128_v16 = vadd.f32 %v6016_v11, %v2082_v14  ;;  %v2074_v2 = vadd.f32 %v2073_v5, %v1901_v56  ;;  %4843 = vmatprep.mubr.msk.bf16.mxu1 %vm1715_vm4, %v3455_v57 }
 0x1c3   : > { %2161 = vst.msk [vmem:[%s6021_s17 + $0xd8] sm:$0xff] %vm2133_vm10, %v2128_v16  ;;  %v2126_v26 = vadd.f32 %v6016_v11, %v2074_v2 }
 0x1c4   : > { %4806 = vmatmul.mubr.msk.bf16.vlgmr.msra.gmra.mxu0 %vm1715_vm4, %v3455_v57  ;;  %v3473_v57 = vpop.permute.xlu0 %3472  ;;  %v3475_v14 = vpop.permute.xlu1 %3474 }
 0x1c5   : > { %2159 = vst.msk [vmem:[%s6021_s17 + $0xc8] sm:$0xff] %vm2133_vm10, %v2126_v26  ;;  %4809 = vmatprep.mubr.msk.bf16.mxu0 %vm1715_vm4, %v3457_v48 }
 0x1c6   : > { %v4665_v47 = vpop.f32.mrf.mxu1 }
 0x1c8   : > { %v2086_v49 = vpop.f32.mrf.mxu1  ;;  %4844 = vmatmul.mubr.msk.bf16.gmra.mxu1 %vm1715_vm4, %v3457_v48  ;;  %v3477_v16 = vpop.permute.xlu0 %3476 }
 0x1c9   : > { %4847 = vmatprep.mubr.msk.bf16.mxu1 %vm1715_vm4, %v3459_v62 }
 0x1ca   : > { %v4631_v24 = vpop.f32.mrf.mxu0  ;;  %v4666_v15 = vpop.f32.mrf.mxu1 }
 0x1cb   : > { %v2095_v8 = vadd.f32 %v4665_v47, %v4631_v24  ;;  %v3479_v24 = vpop.permute.xlu1 %3478 }
 0x1cc   : > { %v1914_v35 = vpop.f32.mrf.mxu0  ;;  %v2089_v13 = vpop.f32.mrf.mxu1  ;;  %4810 = vmatmul.mubr.msk.bf16.gmra.mxu0 %vm1715_vm4, %v3459_v62 }
 0x1cd   : > { %v2131_v18 = vadd.f32 %v6016_v11, %v2095_v8  ;;  %v2087_v43 = vadd.f32 %v2086_v49, %v1914_v35  ;;  %4813 = vmatprep.mubr.msk.bf16.mxu0 %vm1715_vm4, %v3461_v28 }
 0x1ce   : > { %v4632_v34 = vpop.f32.mrf.mxu0  ;;  %v4705_v7 = vpop.f32.mrf.mxu1 }
 0x1cf   : > { %2164 = vst.msk [vmem:[%s6021_s17 + $0xf0] sm:$0xff] %vm2133_vm10, %v2131_v18  ;;  %v2129_v23 = vadd.f32 %v6016_v11, %v2087_v43  ;;  %v2098_v45 = vadd.f32 %v4666_v15, %v4632_v34  ;;  %v3481_v34 = vpop.permute.xlu0 %3480 }
 0x1d0   : > { %v1917_v3 = vpop.f32.mrf.mxu0  ;;  %v2575_v51 = vpop.f32.mrf.mxu1  ;;  %4848 = vmatmul.mubr.msk.bf16.gmra.mxu1 %vm1715_vm4, %v3461_v28 }
 0x1d1   : > { %2162 = vst.msk [vmem:[%s6021_s17 + $0xe0] sm:$0xff] %vm2133_vm10, %v2129_v23  ;;  %v2132_v41 = vadd.f32 %v6016_v11, %v2098_v45  ;;  %v2090_v27 = vadd.f32 %v2089_v13, %v1917_v3  ;;  %4851 = vmatprep.mubr.msk.bf16.mxu1 %vm1715_vm4, %v3463_v52  ;;  %v3483_v23 = vpop.permute.xlu1 %3482 }
 0x1d2   : > { %v4671_v0 = vpop.f32.mrf.mxu0  ;;  %v4706_v36 = vpop.f32.mrf.mxu1 }
 0x1d3   : > { %2165 = vst.msk [vmem:[%s6021_s17 + $0xf8] sm:$0xff] %vm2133_vm10, %v2132_v41  ;;  %v2130_v40 = vadd.f32 %v6016_v11, %v2090_v27  ;;  %v2584_v10 = vadd.f32 %v4705_v7, %v4671_v0 }
 0x1d4   : > { %v2401_v37 = vpop.f32.mrf.mxu0  ;;  %4814 = vmatmul.mubr.msk.bf16.gmra.mxu0 %vm1715_vm4, %v3463_v52  ;;  %v2578_v50 = vpop.f32.mrf.mxu1 }
 0x1d5   : > { %2163 = vst.msk [vmem:[%s6021_s17 + $0xe8] sm:$0xff] %vm2133_vm10, %v2130_v40  ;;  %v2704_v46 = vadd.f32 %v6016_v11, %v2584_v10  ;;  %v2576_v42 = vadd.f32 %v2575_v51, %v2401_v37  ;;  %4817 = vmatprep.mubr.msk.bf16.mxu0 %vm1715_vm4, %v3465_v6 }
 0x1d6   : > { %v4672_v25 = vpop.f32.mrf.mxu0 }
 0x1d7   : > { %4199 = vst.msk [vmem:[%s6021_s17 + $0x110] sm:$0xff] %vm2133_vm10, %v2704_v46  ;;  %v2702_v53 = vadd.f32 %v6016_v11, %v2576_v42  ;;  %v2587_v12 = vadd.f32 %v4706_v36, %v4672_v25  ;;  %v4709_v21 = vpop.f32.mrf.mxu1 }
 0x1d8   : > { %v2404_v59 = vpop.f32.mrf.mxu0  ;;  %4852 = vmatmul.mubr.msk.bf16.gmra.mxu1 %vm1715_vm4, %v3465_v6 }
 0x1d9   : > { %4197 = vst.msk [vmem:[%s6021_s17 + $0x100] sm:$0xff] %vm2133_vm10, %v2702_v53  ;;  %v2705_v17 = vadd.f32 %v6016_v11, %v2587_v12  ;;  %v2579_v63 = vadd.f32 %v2578_v50, %v2404_v59  ;;  %4855 = vmatprep.mubr.msk.bf16.mxu1 %vm1715_vm4, %v3467_v1  ;;  %v2591_v39 = vpop.f32.mrf.mxu1 }
 0x1db   : > { %4200 = vst.msk [vmem:[%s6021_s17 + $0x118] sm:$0xff] %vm2133_vm10, %v2705_v17  ;;  %v2703_v54 = vadd.f32 %v6016_v11, %v2579_v63  ;;  %v4675_v60 = vpop.f32.mrf.mxu0  ;;  %v4710_v55 = vpop.f32.mrf.mxu1 }
 0x1dc   : > { %4818 = vmatmul.mubr.msk.bf16.gmra.mxu0 %vm1715_vm4, %v3467_v1  ;;  %v2600_v22 = vadd.f32 %v4709_v21, %v4675_v60 }
 0x1dd   : > { %4198 = vst.msk [vmem:[%s6021_s17 + $0x108] sm:$0xff] %vm2133_vm10, %v2703_v54  ;;  %4821 = vmatprep.mubr.msk.bf16.mxu0 %vm1715_vm4, %v3469_v32  ;;  %v2417_v44 = vpop.f32.mrf.mxu0  ;;  %v2594_v30 = vpop.f32.mrf.mxu1 }
 0x1de   : > { %v2708_v58 = vadd.f32 %v6016_v11, %v2600_v22  ;;  %v2592_v61 = vadd.f32 %v2591_v39, %v2417_v44 }
 0x1df   : > { %v4676_v38 = vpop.f32.mrf.mxu0 }
 0x1e0   : > { %4856 = vmatmul.mubr.msk.bf16.gmra.mxu1 %vm1715_vm4, %v3469_v32  ;;  %4203 = vst.msk [vmem:[%s6021_s17 + $0x130] sm:$0xff] %vm2133_vm10, %v2708_v58  ;;  %v2706_v33 = vadd.f32 %v6016_v11, %v2592_v61  ;;  %v2603_v4 = vadd.f32 %v4710_v55, %v4676_v38 }
 0x1e1   : > { %4859 = vmatprep.mubr.msk.bf16.mxu1 %vm1715_vm4, %v3471_v20  ;;  %v2420_v29 = vpop.f32.mrf.mxu0 }
 0x1e2   : > { %4201 = vst.msk [vmem:[%s6021_s17 + $0x120] sm:$0xff] %vm2133_vm10, %v2706_v33  ;;  %v2709_v31 = vadd.f32 %v6016_v11, %v2603_v4  ;;  %v2595_v9 = vadd.f32 %v2594_v30, %v2420_v29 }
 0x1e4   : > { %4822 = vmatmul.mubr.msk.bf16.gmra.mxu0 %vm1715_vm4, %v3471_v20  ;;  %4204 = vst.msk [vmem:[%s6021_s17 + $0x138] sm:$0xff] %vm2133_vm10, %v2709_v31  ;;  %v2707_v19 = vadd.f32 %v6016_v11, %v2595_v9 }
 0x1e5   : > { %4825 = vmatprep.mubr.msk.bf16.mxu0 %vm1715_vm4, %v3473_v57 }
 0x1e6   : > { %4202 = vst.msk [vmem:[%s6021_s17 + $0x128] sm:$0xff] %vm2133_vm10, %v2707_v19 }
 0x1e7   : > { %v4713_v5 = vpop.f32.mrf.mxu1 }
 0x1e8   : > { %4860 = vmatmul.mubr.msk.bf16.gmra.mxu1 %vm1715_vm4, %v3473_v57 }
 0x1e9   : > { %4863 = vmatprep.mubr.msk.bf16.mxu1 %vm1715_vm4, %v3475_v14  ;;  %v2607_v56 = vpop.f32.mrf.mxu1 }
 0x1eb   : > { %v4679_v2 = vpop.f32.mrf.mxu0  ;;  %v4714_v48 = vpop.f32.mrf.mxu1 }
 0x1ec   : > { %4826 = vmatmul.mubr.msk.bf16.gmra.mxu0 %vm1715_vm4, %v3475_v14  ;;  %v2616_v26 = vadd.f32 %v4713_v5, %v4679_v2 }
 0x1ed   : > { %4829 = vmatprep.mubr.msk.bf16.mxu0 %vm1715_vm4, %v3477_v16  ;;  %v2433_v47 = vpop.f32.mrf.mxu0  ;;  %v2610_v35 = vpop.f32.mrf.mxu1 }
 0x1ee   : > { %v2712_v62 = vadd.f32 %v6016_v11, %v2616_v26  ;;  %v2608_v49 = vadd.f32 %v2607_v56, %v2433_v47 }
 0x1ef   : > { %v4680_v15 = vpop.f32.mrf.mxu0 }
 0x1f0   : > { %4864 = vmatmul.mubr.msk.bf16.gmra.mxu1 %vm1715_vm4, %v3477_v16  ;;  %4207 = vst.msk [vmem:[%s6021_s17 + $0x150] sm:$0xff] %vm2133_vm10, %v2712_v62  ;;  %v2710_v28 = vadd.f32 %v6016_v11, %v2608_v49  ;;  %v2619_v8 = vadd.f32 %v4714_v48, %v4680_v15 }
 0x1f1   : > { %4867 = vmatprep.mubr.msk.bf16.mxu1 %vm1715_vm4, %v3479_v24  ;;  %v2436_v13 = vpop.f32.mrf.mxu0 }
 0x1f2   : > { %4205 = vst.msk [vmem:[%s6021_s17 + $0x140] sm:$0xff] %vm2133_vm10, %v2710_v28  ;;  %v2713_v18 = vadd.f32 %v6016_v11, %v2619_v8  ;;  %v2611_v43 = vadd.f32 %v2610_v35, %v2436_v13 }
 0x1f4   : > { %4830 = vmatmul.mubr.msk.bf16.gmra.mxu0 %vm1715_vm4, %v3479_v24  ;;  %4208 = vst.msk [vmem:[%s6021_s17 + $0x158] sm:$0xff] %vm2133_vm10, %v2713_v18  ;;  %v2711_v7 = vadd.f32 %v6016_v11, %v2611_v43 }
 0x1f5   : > { %4833 = vmatprep.mubr.msk.bf16.mxu0 %vm1715_vm4, %v3481_v34 }
 0x1f6   : > { %4206 = vst.msk [vmem:[%s6021_s17 + $0x148] sm:$0xff] %vm2133_vm10, %v2711_v7 }
 0x1f7   : > { %v4717_v52 = vpop.f32.mrf.mxu1 }
 0x1f8   : > { %4868 = vmatmul.mubr.msk.bf16.gmra.mxu1 %vm1715_vm4, %v3481_v34 }
 0x1f9   : > { %v2623_v45 = vpop.f32.mrf.mxu1 }
 0x1fb   : > { %v4683_v3 = vpop.f32.mrf.mxu0  ;;  %v4718_v41 = vpop.f32.mrf.mxu1 }
 0x1fc   : > { %4834 = vmatmul.mubr.msk.bf16.gmra.mxu0 %vm1715_vm4, %v3483_v23  ;;  %v2632_v51 = vadd.f32 %v4717_v52, %v4683_v3 }
 0x1fd   : > { %v2449_v27 = vpop.f32.mrf.mxu0  ;;  %v2626_v37 = vpop.f32.mrf.mxu1 }
 0x1fe   : > { %v2716_v0 = vadd.f32 %v6016_v11, %v2632_v51  ;;  %v2624_v36 = vadd.f32 %v2623_v45, %v2449_v27 }
 0x1ff   : > { %v4684_v40 = vpop.f32.mrf.mxu0 }
 0x200   : > { %4211 = vst.msk [vmem:[%s6021_s17 + $0x170] sm:$0xff] %vm2133_vm10, %v2716_v0  ;;  %v2714_v10 = vadd.f32 %v6016_v11, %v2624_v36  ;;  %v2635_v6 = vadd.f32 %v4718_v41, %v4684_v40 }
 0x201   : > { %v2452_v46 = vpop.f32.mrf.mxu0 }
 0x202   : > { %4209 = vst.msk [vmem:[%s6021_s17 + $0x160] sm:$0xff] %vm2133_vm10, %v2714_v10  ;;  %v2717_v42 = vadd.f32 %v6016_v11, %v2635_v6  ;;  %v2627_v50 = vadd.f32 %v2626_v37, %v2452_v46 }
 0x204   : > { %4212 = vst.msk [vmem:[%s6021_s17 + $0x178] sm:$0xff] %vm2133_vm10, %v2717_v42  ;;  %v2715_v25 = vadd.f32 %v6016_v11, %v2627_v50 }
 0x206   : > { %4210 = vst.msk [vmem:[%s6021_s17 + $0x168] sm:$0xff] %vm2133_vm10, %v2715_v25 }
 0x207   : > { %v4721_v1 = vpop.f32.mrf.mxu1 }
 0x209   : > { %v2639_v53 = vpop.f32.mrf.mxu1 }
 0x20b   : > { %v4722_v21 = vpop.f32.mrf.mxu1 }
 0x20c   : > { %v4687_v12 = vpop.f32.mrf.mxu0 }
 0x20d   : > { %v2648_v59 = vadd.f32 %v4721_v1, %v4687_v12  ;;  %v2642_v22 = vpop.f32.mrf.mxu1 }
 0x20e   : > { %v2465_v17 = vpop.f32.mrf.mxu0 }
 0x20f   : > { %v2720_v63 = vadd.f32 %v6016_v11, %v2648_v59  ;;  %v2640_v39 = vadd.f32 %v2639_v53, %v2465_v17 }
 0x210   : > { %v4688_v54 = vpop.f32.mrf.mxu0 }
 0x211   : > { %4215 = vst.msk [vmem:[%s6021_s17 + $0x190] sm:$0xff] %vm2133_vm10, %v2720_v63  ;;  %v2718_v32 = vadd.f32 %v6016_v11, %v2640_v39  ;;  %v2651_v60 = vadd.f32 %v4722_v21, %v4688_v54 }
 0x212   : > { %v2468_v55 = vpop.f32.mrf.mxu0 }
 0x213   : > { %4213 = vst.msk [vmem:[%s6021_s17 + $0x180] sm:$0xff] %vm2133_vm10, %v2718_v32  ;;  %v2721_v44 = vadd.f32 %v6016_v11, %v2651_v60  ;;  %v2643_v58 = vadd.f32 %v2642_v22, %v2468_v55 }
 0x215   : > { %4216 = vst.msk [vmem:[%s6021_s17 + $0x198] sm:$0xff] %vm2133_vm10, %v2721_v44  ;;  %v2719_v61 = vadd.f32 %v6016_v11, %v2643_v58 }
 0x217   : > { %4214 = vst.msk [vmem:[%s6021_s17 + $0x188] sm:$0xff] %vm2133_vm10, %v2719_v61 }
 0x218   : > { %v4725_v20 = vpop.f32.mrf.mxu1 }
 0x21a   : > { %v2655_v38 = vpop.f32.mrf.mxu1 }
 0x21c   : > { %v4691_v33 = vpop.f32.mrf.mxu0  ;;  %v4726_v30 = vpop.f32.mrf.mxu1 }
 0x21d   : > { %v2664_v4 = vadd.f32 %v4725_v20, %v4691_v33 }
 0x21e   : > { %v2481_v29 = vpop.f32.mrf.mxu0  ;;  %v2658_v5 = vpop.f32.mrf.mxu1 }
 0x21f   : > { %v2724_v31 = vadd.f32 %v6016_v11, %v2664_v4  ;;  %v2656_v9 = vadd.f32 %v2655_v38, %v2481_v29 }
 0x220   : > { %v4692_v57 = vpop.f32.mrf.mxu0 }
 0x221   : > { %4219 = vst.msk [vmem:[%s6021_s17 + $0x1b0] sm:$0xff] %vm2133_vm10, %v2724_v31  ;;  %v2722_v19 = vadd.f32 %v6016_v11, %v2656_v9  ;;  %v2667_v14 = vadd.f32 %v4726_v30, %v4692_v57 }
 0x222   : > { %v2484_v56 = vpop.f32.mrf.mxu0 }
 0x223   : > { %4217 = vst.msk [vmem:[%s6021_s17 + $0x1a0] sm:$0xff] %vm2133_vm10, %v2722_v19  ;;  %v2725_v16 = vadd.f32 %v6016_v11, %v2667_v14  ;;  %v2659_v2 = vadd.f32 %v2658_v5, %v2484_v56 }
 0x225   : > { %4220 = vst.msk [vmem:[%s6021_s17 + $0x1b8] sm:$0xff] %vm2133_vm10, %v2725_v16  ;;  %v2723_v26 = vadd.f32 %v6016_v11, %v2659_v2 }
 0x227   : > { %4218 = vst.msk [vmem:[%s6021_s17 + $0x1a8] sm:$0xff] %vm2133_vm10, %v2723_v26 }
 0x228   : > { %v4729_v48 = vpop.f32.mrf.mxu1 }
 0x22a   : > { %v2671_v47 = vpop.f32.mrf.mxu1 }
 0x22c   : > { %v4695_v62 = vpop.f32.mrf.mxu0  ;;  %v4730_v24 = vpop.f32.mrf.mxu1 }
 0x22d   : > { %v2680_v49 = vadd.f32 %v4729_v48, %v4695_v62 }
 0x22e   : > { %v2497_v15 = vpop.f32.mrf.mxu0  ;;  %v2674_v43 = vpop.f32.mrf.mxu1 }
 0x22f   : > { %v2728_v28 = vadd.f32 %v6016_v11, %v2680_v49  ;;  %v2672_v8 = vadd.f32 %v2671_v47, %v2497_v15 }
 0x230   : > { %v4696_v35 = vpop.f32.mrf.mxu0 }
 0x231   : > { %4223 = vst.msk [vmem:[%s6021_s17 + $0x1d0] sm:$0xff] %vm2133_vm10, %v2728_v28  ;;  %v2726_v13 = vadd.f32 %v6016_v11, %v2672_v8  ;;  %v2683_v18 = vadd.f32 %v4730_v24, %v4696_v35 }
 0x232   : > { %v2500_v34 = vpop.f32.mrf.mxu0 }
 0x233   : > { %4221 = vst.msk [vmem:[%s6021_s17 + $0x1c0] sm:$0xff] %vm2133_vm10, %v2726_v13  ;;  %v2729_v7 = vadd.f32 %v6016_v11, %v2683_v18  ;;  %v2675_v52 = vadd.f32 %v2674_v43, %v2500_v34 }
 0x235   : > { %4224 = vst.msk [vmem:[%s6021_s17 + $0x1d8] sm:$0xff] %vm2133_vm10, %v2729_v7  ;;  %v2727_v23 = vadd.f32 %v6016_v11, %v2675_v52 }
 0x237   : > { %4222 = vst.msk [vmem:[%s6021_s17 + $0x1c8] sm:$0xff] %vm2133_vm10, %v2727_v23 }
 0x238   : > { %v4733_v45 = vpop.f32.mrf.mxu1 }
 0x23a   : > { %v2687_v3 = vpop.f32.mrf.mxu1 }
 0x23c   : > { %v4699_v51 = vpop.f32.mrf.mxu0  ;;  %v4734_v41 = vpop.f32.mrf.mxu1 }
 0x23d   : > { %v2696_v27 = vadd.f32 %v4733_v45, %v4699_v51 }
 0x23e   : > { %v2513_v0 = vpop.f32.mrf.mxu0  ;;  %v2690_v36 = vpop.f32.mrf.mxu1 }
 0x23f   : > { %v2732_v40 = vadd.f32 %v6016_v11, %v2696_v27  ;;  %v2688_v10 = vadd.f32 %v2687_v3, %v2513_v0 }
 0x240   : > { %v4700_v6 = vpop.f32.mrf.mxu0  ;;  %v4773_v37 = vpop.f32.mrf.mxu1 }
 0x241   : > { %4227 = vst.msk [vmem:[%s6021_s17 + $0x1f0] sm:$0xff] %vm2133_vm10, %v2732_v40  ;;  %v2730_v46 = vadd.f32 %v6016_v11, %v2688_v10  ;;  %v2699_v42 = vadd.f32 %v4734_v41, %v4700_v6 }
 0x242   : > { %v2516_v50 = vpop.f32.mrf.mxu0  ;;  %v3142_v25 = vpop.f32.mrf.mxu1 }
 0x243   : > { %4225 = vst.msk [vmem:[%s6021_s17 + $0x1e0] sm:$0xff] %vm2133_vm10, %v2730_v46  ;;  %v2733_v1 = vadd.f32 %v6016_v11, %v2699_v42  ;;  %v2691_v53 = vadd.f32 %v2690_v36, %v2516_v50 }
 0x244   : > { %v4739_v12 = vpop.f32.mrf.mxu0  ;;  %v4774_v59 = vpop.f32.mrf.mxu1 }
 0x245   : > { %4228 = vst.msk [vmem:[%s6021_s17 + $0x1f8] sm:$0xff] %vm2133_vm10, %v2733_v1  ;;  %v2731_v21 = vadd.f32 %v6016_v11, %v2691_v53  ;;  %v3151_v17 = vadd.f32 %v4773_v37, %v4739_v12 }
 0x246   : > { %v2970_v63 = vpop.f32.mrf.mxu0  ;;  %v3145_v39 = vpop.f32.mrf.mxu1 }
 0x247   : > { %4226 = vst.msk [vmem:[%s6021_s17 + $0x1e8] sm:$0xff] %vm2133_vm10, %v2731_v21  ;;  %v3271_v54 = vadd.f32 %v6016_v11, %v3151_v17  ;;  %v3143_v32 = vadd.f32 %v3142_v25, %v2970_v63  ;;  %v6338_v17 = vld [vmem:[%s6492_s2] ss:$0 sm:$0xff] }
 0x248   : > { %v4740_v60 = vpop.f32.mrf.mxu0  ;;  %v4777_v22 = vpop.f32.mrf.mxu1 }
 0x249   : > { %4282 = vst.msk [vmem:[%s6021_s17 + $0x210] sm:$0xff] %vm2133_vm10, %v3271_v54  ;;  %v3269_v55 = vadd.f32 %v6016_v11, %v3143_v32  ;;  %v3154_v44 = vadd.f32 %v4774_v59, %v4740_v60 }
 0x24a   : > { %v2973_v58 = vpop.f32.mrf.mxu0  ;;  %v3158_v61 = vpop.f32.mrf.mxu1 }
 0x24b   : > { %4280 = vst.msk [vmem:[%s6021_s17 + $0x200] sm:$0xff] %vm2133_vm10, %v3269_v55  ;;  %v3272_v20 = vadd.f32 %v6016_v11, %v3154_v44  ;;  %v3146_v38 = vadd.f32 %v3145_v39, %v2973_v58 }
 0x24c   : > { %v4743_v33 = vpop.f32.mrf.mxu0  ;;  %v4778_v4 = vpop.f32.mrf.mxu1 }
 0x24d   : > { %4283 = vst.msk [vmem:[%s6021_s17 + $0x218] sm:$0xff] %vm2133_vm10, %v3272_v20  ;;  %v3270_v30 = vadd.f32 %v6016_v11, %v3146_v38  ;;  %v3167_v29 = vadd.f32 %v4777_v22, %v4743_v33 }
 0x24e   : > { %v2986_v31 = vpop.f32.mrf.mxu0  ;;  %v3161_v9 = vpop.f32.mrf.mxu1 }
 0x24f   : > { %4281 = vst.msk [vmem:[%s6021_s17 + $0x208] sm:$0xff] %vm2133_vm10, %v3270_v30  ;;  %v3275_v57 = vadd.f32 %v6016_v11, %v3167_v29  ;;  %v3159_v19 = vadd.f32 %v3158_v61, %v2986_v31 }
 0x250   : > { %v4744_v14 = vpop.f32.mrf.mxu0  ;;  %v4781_v5 = vpop.f32.mrf.mxu1 }
 0x251   : > { %4286 = vst.msk [vmem:[%s6021_s17 + $0x230] sm:$0xff] %vm2133_vm10, %v3275_v57  ;;  %v3273_v56 = vadd.f32 %v6016_v11, %v3159_v19  ;;  %v3170_v16 = vadd.f32 %v4778_v4, %v4744_v14 }
 0x252   : > { %v2989_v2 = vpop.f32.mrf.mxu0  ;;  %v3174_v26 = vpop.f32.mrf.mxu1 }
 0x253   : > { %4284 = vst.msk [vmem:[%s6021_s17 + $0x220] sm:$0xff] %vm2133_vm10, %v3273_v56  ;;  %v3276_v48 = vadd.f32 %v6016_v11, %v3170_v16  ;;  %v3162_v47 = vadd.f32 %v3161_v9, %v2989_v2 }
 0x254   : > { %v4747_v62 = vpop.f32.mrf.mxu0  ;;  %v4782_v49 = vpop.f32.mrf.mxu1 }
 0x255   : > { %4287 = vst.msk [vmem:[%s6021_s17 + $0x238] sm:$0xff] %vm2133_vm10, %v3276_v48  ;;  %v3274_v24 = vadd.f32 %v6016_v11, %v3162_v47  ;;  %v3183_v15 = vadd.f32 %v4781_v5, %v4747_v62 }
 0x256   : > { %v3002_v28 = vpop.f32.mrf.mxu0  ;;  %v3177_v8 = vpop.f32.mrf.mxu1 }
 0x257   : > { %4285 = vst.msk [vmem:[%s6021_s17 + $0x228] sm:$0xff] %vm2133_vm10, %v3274_v24  ;;  %v3279_v35 = vadd.f32 %v6016_v11, %v3183_v15  ;;  %v3175_v13 = vadd.f32 %v3174_v26, %v3002_v28 }
 0x258   : > { %v4748_v18 = vpop.f32.mrf.mxu0  ;;  %v4785_v43 = vpop.f32.mrf.mxu1 }
 0x259   : > { %4290 = vst.msk [vmem:[%s6021_s17 + $0x250] sm:$0xff] %vm2133_vm10, %v3279_v35  ;;  %v3277_v34 = vadd.f32 %v6016_v11, %v3175_v13  ;;  %v3186_v7 = vadd.f32 %v4782_v49, %v4748_v18 }
 0x25a   : > { %v3005_v52 = vpop.f32.mrf.mxu0  ;;  %v3190_v23 = vpop.f32.mrf.mxu1 }
 0x25b   : > { %4288 = vst.msk [vmem:[%s6021_s17 + $0x240] sm:$0xff] %vm2133_vm10, %v3277_v34  ;;  %v3280_v45 = vadd.f32 %v6016_v11, %v3186_v7  ;;  %v3178_v3 = vadd.f32 %v3177_v8, %v3005_v52 }
 0x25c   : > { %v4751_v51 = vpop.f32.mrf.mxu0  ;;  %v4786_v41 = vpop.f32.mrf.mxu1 }
 0x25d   : > { %4291 = vst.msk [vmem:[%s6021_s17 + $0x258] sm:$0xff] %vm2133_vm10, %v3280_v45  ;;  %v3278_v27 = vadd.f32 %v6016_v11, %v3178_v3  ;;  %v3199_v0 = vadd.f32 %v4785_v43, %v4751_v51 }
 0x25e   : > { %v3018_v36 = vpop.f32.mrf.mxu0  ;;  %v3193_v40 = vpop.f32.mrf.mxu1 }
 0x25f   : > { %4289 = vst.msk [vmem:[%s6021_s17 + $0x248] sm:$0xff] %vm2133_vm10, %v3278_v27  ;;  %v3283_v10 = vadd.f32 %v6016_v11, %v3199_v0  ;;  %v3191_v6 = vadd.f32 %v3190_v23, %v3018_v36 }
 0x260   : > { %v4752_v37 = vpop.f32.mrf.mxu0  ;;  %v4789_v46 = vpop.f32.mrf.mxu1 }
 0x261   : > { %4294 = vst.msk [vmem:[%s6021_s17 + $0x270] sm:$0xff] %vm2133_vm10, %v3283_v10  ;;  %v3281_v42 = vadd.f32 %v6016_v11, %v3191_v6  ;;  %v3202_v50 = vadd.f32 %v4786_v41, %v4752_v37 }
 0x262   : > { %v3021_v25 = vpop.f32.mrf.mxu0  ;;  %v3206_v1 = vpop.f32.mrf.mxu1 }
 0x263   : > { %4292 = vst.msk [vmem:[%s6021_s17 + $0x260] sm:$0xff] %vm2133_vm10, %v3281_v42  ;;  %v3284_v53 = vadd.f32 %v6016_v11, %v3202_v50  ;;  %v3194_v12 = vadd.f32 %v3193_v40, %v3021_v25 }
 0x264   : > { %v4755_v59 = vpop.f32.mrf.mxu0  ;;  %v4790_v21 = vpop.f32.mrf.mxu1 }
 0x265   : > { %4295 = vst.msk [vmem:[%s6021_s17 + $0x278] sm:$0xff] %vm2133_vm10, %v3284_v53  ;;  %v3282_v63 = vadd.f32 %v6338_v17, %v3194_v12  ;;  %v3215_v39 = vadd.f32 %v4789_v46, %v4755_v59 }
 0x266   : > { %v3034_v54 = vpop.f32.mrf.mxu0  ;;  %v3209_v32 = vpop.f32.mrf.mxu1 }
 0x267   : > { %4293 = vst.msk [vmem:[%s6021_s17 + $0x268] sm:$0xff] %vm2133_vm10, %v3282_v63  ;;  %v3287_v11 = vadd.f32 %v6338_v17, %v3215_v39  ;;  %v3207_v60 = vadd.f32 %v3206_v1, %v3034_v54 }
 0x268   : > { %v4756_v22 = vpop.f32.mrf.mxu0  ;;  %v4793_v55 = vpop.f32.mrf.mxu1 }
 0x269   : > { %4298 = vst.msk [vmem:[%s6021_s17 + $0x290] sm:$0xff] %vm2133_vm10, %v3287_v11  ;;  %v3285_v44 = vadd.f32 %v6338_v17, %v3207_v60  ;;  %v3218_v58 = vadd.f32 %v4790_v21, %v4756_v22 }
 0x26a   : > { %v3037_v61 = vpop.f32.mrf.mxu0  ;;  %v3222_v20 = vpop.f32.mrf.mxu1 }
 0x26b   : > { %4296 = vst.msk [vmem:[%s6021_s17 + $0x280] sm:$0xff] %vm2133_vm10, %v3285_v44  ;;  %v3288_v38 = vadd.f32 %v6338_v17, %v3218_v58  ;;  %v3210_v33 = vadd.f32 %v3209_v32, %v3037_v61 }
 0x26c   : > { %v4759_v4 = vpop.f32.mrf.mxu0  ;;  %v4794_v30 = vpop.f32.mrf.mxu1 }
 0x26d   : > { %4299 = vst.msk [vmem:[%s6021_s17 + $0x298] sm:$0xff] %vm2133_vm10, %v3288_v38  ;;  %v3286_v29 = vadd.f32 %v6338_v17, %v3210_v33  ;;  %v3231_v31 = vadd.f32 %v4793_v55, %v4759_v4 }
 0x26e   : > { %v3050_v9 = vpop.f32.mrf.mxu0  ;;  %v3225_v57 = vpop.f32.mrf.mxu1 }
 0x26f   : > { %4297 = vst.msk [vmem:[%s6021_s17 + $0x288] sm:$0xff] %vm2133_vm10, %v3286_v29  ;;  %v3291_v19 = vadd.f32 %v6338_v17, %v3231_v31  ;;  %v3223_v14 = vadd.f32 %v3222_v20, %v3050_v9 }
 0x270   : > { %v4760_v5 = vpop.f32.mrf.mxu0  ;;  %v4797_v56 = vpop.f32.mrf.mxu1 }
 0x271   : > { %4302 = vst.msk [vmem:[%s6021_s17 + $0x2b0] sm:$0xff] %vm2133_vm10, %v3291_v19  ;;  %v3289_v16 = vadd.f32 %v6338_v17, %v3223_v14  ;;  %v3234_v2 = vadd.f32 %v4794_v30, %v4760_v5 }
 0x272   : > { %v3053_v26 = vpop.f32.mrf.mxu0  ;;  %v3238_v48 = vpop.f32.mrf.mxu1 }
 0x273   : > { %4300 = vst.msk [vmem:[%s6021_s17 + $0x2a0] sm:$0xff] %vm2133_vm10, %v3289_v16  ;;  %v3292_v47 = vadd.f32 %v6338_v17, %v3234_v2  ;;  %v3226_v62 = vadd.f32 %v3225_v57, %v3053_v26 }
 0x274   : > { %v4763_v49 = vpop.f32.mrf.mxu0  ;;  %v4798_v24 = vpop.f32.mrf.mxu1 }
 0x275   : > { %4303 = vst.msk [vmem:[%s6021_s17 + $0x2b8] sm:$0xff] %vm2133_vm10, %v3292_v47  ;;  %v3290_v15 = vadd.f32 %v6338_v17, %v3226_v62  ;;  %v3247_v28 = vadd.f32 %v4797_v56, %v4763_v49 }
 0x276   : > { %v3066_v8 = vpop.f32.mrf.mxu0  ;;  %v3241_v35 = vpop.f32.mrf.mxu1 }
 0x277   : > { %4301 = vst.msk [vmem:[%s6021_s17 + $0x2a8] sm:$0xff] %vm2133_vm10, %v3290_v15  ;;  %v3295_v13 = vadd.f32 %v6338_v17, %v3247_v28  ;;  %v3239_v18 = vadd.f32 %v3238_v48, %v3066_v8 }
 0x278   : > { %v4764_v43 = vpop.f32.mrf.mxu0  ;;  %v4801_v34 = vpop.f32.mrf.mxu1 }
 0x279   : > { %4306 = vst.msk [vmem:[%s6021_s17 + $0x2d0] sm:$0xff] %vm2133_vm10, %v3295_v13  ;;  %v3293_v7 = vadd.f32 %v6338_v17, %v3239_v18  ;;  %v3250_v52 = vadd.f32 %v4798_v24, %v4764_v43 }
 0x27a   : > { %v3069_v23 = vpop.f32.mrf.mxu0  ;;  %v3254_v45 = vpop.f32.mrf.mxu1 }
 0x27b   : > { %4304 = vst.msk [vmem:[%s6021_s17 + $0x2c0] sm:$0xff] %vm2133_vm10, %v3293_v7  ;;  %v3296_v3 = vadd.f32 %v6338_v17, %v3250_v52  ;;  %v3242_v51 = vadd.f32 %v3241_v35, %v3069_v23 }
 0x27c   : > { %v4767_v41 = vpop.f32.mrf.mxu0  ;;  %v4802_v27 = vpop.f32.mrf.mxu1 }
 0x27d   : > { %4307 = vst.msk [vmem:[%s6021_s17 + $0x2d8] sm:$0xff] %vm2133_vm10, %v3296_v3  ;;  %v3294_v0 = vadd.f32 %v6338_v17, %v3242_v51  ;;  %v3263_v36 = vadd.f32 %v4801_v34, %v4767_v41 }
 0x27e   : > { %v3082_v40 = vpop.f32.mrf.mxu0  ;;  %v3257_v10 = vpop.f32.mrf.mxu1 }
 0x27f   : > { %4305 = vst.msk [vmem:[%s6021_s17 + $0x2c8] sm:$0xff] %vm2133_vm10, %v3294_v0  ;;  %v3299_v6 = vadd.f32 %v6338_v17, %v3263_v36  ;;  %v3255_v37 = vadd.f32 %v3254_v45, %v3082_v40 }
 0x280   : > { %v4768_v46 = vpop.f32.mrf.mxu0  ;;  %v4841_v42 = vpop.f32.mrf.mxu1 }
 0x281   : > { %4310 = vst.msk [vmem:[%s6021_s17 + $0x2f0] sm:$0xff] %vm2133_vm10, %v3299_v6  ;;  %v3297_v50 = vadd.f32 %v6338_v17, %v3255_v37  ;;  %v3266_v25 = vadd.f32 %v4802_v27, %v4768_v46 }
 0x282   : > { %v3085_v1 = vpop.f32.mrf.mxu0  ;;  %v3743_v53 = vpop.f32.mrf.mxu1 }
 0x283   : > { %4308 = vst.msk [vmem:[%s6021_s17 + $0x2e0] sm:$0xff] %vm2133_vm10, %v3297_v50  ;;  %v3300_v12 = vadd.f32 %v6338_v17, %v3266_v25  ;;  %v3258_v59 = vadd.f32 %v3257_v10, %v3085_v1 }
 0x284   : > { %v4807_v21 = vpop.f32.mrf.mxu0  ;;  %v4842_v63 = vpop.f32.mrf.mxu1 }
 0x285   : > { %4311 = vst.msk [vmem:[%s6021_s17 + $0x2f8] sm:$0xff] %vm2133_vm10, %v3300_v12  ;;  %v3298_v39 = vadd.f32 %v6338_v17, %v3258_v59  ;;  %v3752_v54 = vadd.f32 %v4841_v42, %v4807_v21 }
 0x286   : > { %v3569_v32 = vpop.f32.mrf.mxu0  ;;  %v3746_v11 = vpop.f32.mrf.mxu1 }
 0x287   : > { %4309 = vst.msk [vmem:[%s6021_s17 + $0x2e8] sm:$0xff] %vm2133_vm10, %v3298_v39  ;;  %v3872_v60 = vadd.f32 %v6338_v17, %v3752_v54  ;;  %v3744_v22 = vadd.f32 %v3743_v53, %v3569_v32 }
 0x288   : > { %v4808_v55 = vpop.f32.mrf.mxu0  ;;  %v4845_v44 = vpop.f32.mrf.mxu1 }
 0x289   : > { %4365 = vst.msk [vmem:[%s6021_s17 + $0x310] sm:$0xff] %vm2133_vm10, %v3872_v60  ;;  %v3870_v58 = vadd.f32 %v6338_v17, %v3744_v22  ;;  %v3755_v61 = vadd.f32 %v4842_v63, %v4808_v55 }
 0x28a   : > { %v3572_v20 = vpop.f32.mrf.mxu0  ;;  %v3759_v38 = vpop.f32.mrf.mxu1 }
 0x28b   : > { %4363 = vst.msk [vmem:[%s6021_s17 + $0x300] sm:$0xff] %vm2133_vm10, %v3870_v58  ;;  %v3873_v33 = vadd.f32 %v6338_v17, %v3755_v61  ;;  %v3747_v4 = vadd.f32 %v3746_v11, %v3572_v20 }
 0x28c   : > { %v4811_v30 = vpop.f32.mrf.mxu0  ;;  %v4846_v29 = vpop.f32.mrf.mxu1 }
 0x28d   : > { %4366 = vst.msk [vmem:[%s6021_s17 + $0x318] sm:$0xff] %vm2133_vm10, %v3873_v33  ;;  %v3871_v31 = vadd.f32 %v6338_v17, %v3747_v4  ;;  %v3768_v9 = vadd.f32 %v4845_v44, %v4811_v30 }
 0x28e   : > { %v3585_v57 = vpop.f32.mrf.mxu0  ;;  %v3762_v19 = vpop.f32.mrf.mxu1 }
 0x28f   : > { %4364 = vst.msk [vmem:[%s6021_s17 + $0x308] sm:$0xff] %vm2133_vm10, %v3871_v31  ;;  %v3876_v14 = vadd.f32 %v6338_v17, %v3768_v9  ;;  %v3760_v5 = vadd.f32 %v3759_v38, %v3585_v57 }
 0x290   : > { %v4812_v56 = vpop.f32.mrf.mxu0  ;;  %v4849_v16 = vpop.f32.mrf.mxu1 }
 0x291   : > { %4369 = vst.msk [vmem:[%s6021_s17 + $0x330] sm:$0xff] %vm2133_vm10, %v3876_v14  ;;  %v3874_v2 = vadd.f32 %v6338_v17, %v3760_v5  ;;  %v3771_v26 = vadd.f32 %v4846_v29, %v4812_v56 }
 0x292   : > { %v3588_v48 = vpop.f32.mrf.mxu0  ;;  %v3775_v47 = vpop.f32.mrf.mxu1 }
 0x293   : > { %4367 = vst.msk [vmem:[%s6021_s17 + $0x320] sm:$0xff] %vm2133_vm10, %v3874_v2  ;;  %v3877_v62 = vadd.f32 %v6338_v17, %v3771_v26  ;;  %v3763_v49 = vadd.f32 %v3762_v19, %v3588_v48 }
 0x294   : > { %v4815_v24 = vpop.f32.mrf.mxu0  ;;  %v4850_v15 = vpop.f32.mrf.mxu1 }
 0x295   : > { %4370 = vst.msk [vmem:[%s6021_s17 + $0x338] sm:$0xff] %vm2133_vm10, %v3877_v62  ;;  %v3875_v28 = vadd.f32 %v6338_v17, %v3763_v49  ;;  %v3784_v8 = vadd.f32 %v4849_v16, %v4815_v24 }
 0x296   : > { %v3601_v35 = vpop.f32.mrf.mxu0  ;;  %v3778_v13 = vpop.f32.mrf.mxu1 }
 0x297   : > { %4368 = vst.msk [vmem:[%s6021_s17 + $0x328] sm:$0xff] %vm2133_vm10, %v3875_v28  ;;  %v3880_v18 = vadd.f32 %v6338_v17, %v3784_v8  ;;  %v3776_v43 = vadd.f32 %v3775_v47, %v3601_v35 }
 0x298   : > { %v4816_v34 = vpop.f32.mrf.mxu0  ;;  %v4853_v7 = vpop.f32.mrf.mxu1 }
 0x299   : > { %4373 = vst.msk [vmem:[%s6021_s17 + $0x350] sm:$0xff] %vm2133_vm10, %v3880_v18  ;;  %v3878_v52 = vadd.f32 %v6338_v17, %v3776_v43  ;;  %v3787_v23 = vadd.f32 %v4850_v15, %v4816_v34 }
 0x29a   : > { %v3604_v45 = vpop.f32.mrf.mxu0  ;;  %v3791_v3 = vpop.f32.mrf.mxu1 }
 0x29b   : > { %4371 = vst.msk [vmem:[%s6021_s17 + $0x340] sm:$0xff] %vm2133_vm10, %v3878_v52  ;;  %v3881_v51 = vadd.f32 %v6338_v17, %v3787_v23  ;;  %v3779_v41 = vadd.f32 %v3778_v13, %v3604_v45 }
 0x29c   : > { %v4819_v27 = vpop.f32.mrf.mxu0  ;;  %v4854_v0 = vpop.f32.mrf.mxu1 }
 0x29d   : > { %4374 = vst.msk [vmem:[%s6021_s17 + $0x358] sm:$0xff] %vm2133_vm10, %v3881_v51  ;;  %v3879_v36 = vadd.f32 %v6338_v17, %v3779_v41  ;;  %v3800_v40 = vadd.f32 %v4853_v7, %v4819_v27 }
 0x29e   : > { %v3617_v10 = vpop.f32.mrf.mxu0  ;;  %v3794_v6 = vpop.f32.mrf.mxu1 }
 0x29f   : > { %4372 = vst.msk [vmem:[%s6021_s17 + $0x348] sm:$0xff] %vm2133_vm10, %v3879_v36  ;;  %v3884_v37 = vadd.f32 %v6338_v17, %v3800_v40  ;;  %v3792_v46 = vadd.f32 %v3791_v3, %v3617_v10 }
 0x2a0   : > { %v4820_v42 = vpop.f32.mrf.mxu0  ;;  %v4857_v50 = vpop.f32.mrf.mxu1 }
 0x2a1   : > { %4377 = vst.msk [vmem:[%s6021_s17 + $0x370] sm:$0xff] %vm2133_vm10, %v3884_v37  ;;  %v3882_v25 = vadd.f32 %v6338_v17, %v3792_v46  ;;  %v3803_v1 = vadd.f32 %v4854_v0, %v4820_v42 }
 0x2a2   : > { %v3620_v53 = vpop.f32.mrf.mxu0  ;;  %v3807_v12 = vpop.f32.mrf.mxu1 }
 0x2a3   : > { %4375 = vst.msk [vmem:[%s6021_s17 + $0x360] sm:$0xff] %vm2133_vm10, %v3882_v25  ;;  %v3885_v59 = vadd.f32 %v6338_v17, %v3803_v1  ;;  %v3795_v21 = vadd.f32 %v3794_v6, %v3620_v53 }
 0x2a4   : > { %v4823_v63 = vpop.f32.mrf.mxu0  ;;  %v4858_v39 = vpop.f32.mrf.mxu1 }
 0x2a5   : > { %4378 = vst.msk [vmem:[%s6021_s17 + $0x378] sm:$0xff] %vm2133_vm10, %v3885_v59  ;;  %v3883_v54 = vadd.f32 %v6338_v17, %v3795_v21  ;;  %v3816_v32 = vadd.f32 %v4857_v50, %v4823_v63 }
 0x2a6   : > { %v3633_v11 = vpop.f32.mrf.mxu0  ;;  %v3810_v60 = vpop.f32.mrf.mxu1 }
 0x2a7   : > { %4376 = vst.msk [vmem:[%s6021_s17 + $0x368] sm:$0xff] %vm2133_vm10, %v3883_v54  ;;  %v3888_v22 = vadd.f32 %v6338_v17, %v3816_v32  ;;  %v3808_v55 = vadd.f32 %v3807_v12, %v3633_v11 }
 0x2a8   : > { %v4824_v44 = vpop.f32.mrf.mxu0  ;;  %v4861_v58 = vpop.f32.mrf.mxu1 }
 0x2a9   : > { %4381 = vst.msk [vmem:[%s6021_s17 + $0x390] sm:$0xff] %vm2133_vm10, %v3888_v22  ;;  %v3886_v61 = vadd.f32 %v6338_v17, %v3808_v55  ;;  %v3819_v20 = vadd.f32 %v4858_v39, %v4824_v44 }
 0x2aa   : > { %v3636_v38 = vpop.f32.mrf.mxu0  ;;  %v3823_v33 = vpop.f32.mrf.mxu1 }
 0x2ab   : > { %4379 = vst.msk [vmem:[%s6021_s17 + $0x380] sm:$0xff] %vm2133_vm10, %v3886_v61  ;;  %v3889_v4 = vadd.f32 %v6338_v17, %v3819_v20  ;;  %v3811_v30 = vadd.f32 %v3810_v60, %v3636_v38 }
 0x2ac   : > { %v4827_v29 = vpop.f32.mrf.mxu0  ;;  %v4862_v31 = vpop.f32.mrf.mxu1 }
 0x2ad   : > { %4382 = vst.msk [vmem:[%s6021_s17 + $0x398] sm:$0xff] %vm2133_vm10, %v3889_v4  ;;  %v3887_v9 = vadd.f32 %v6338_v17, %v3811_v30  ;;  %v3832_v57 = vadd.f32 %v4861_v58, %v4827_v29 }
 0x2ae   : > { %v3649_v19 = vpop.f32.mrf.mxu0  ;;  %v3826_v14 = vpop.f32.mrf.mxu1 }
 0x2af   : > { %4380 = vst.msk [vmem:[%s6021_s17 + $0x388] sm:$0xff] %vm2133_vm10, %v3887_v9  ;;  %v3892_v5 = vadd.f32 %v6338_v17, %v3832_v57  ;;  %v3824_v56 = vadd.f32 %v3823_v33, %v3649_v19 }
 0x2b0   : > { %v4828_v16 = vpop.f32.mrf.mxu0  ;;  %v4865_v2 = vpop.f32.mrf.mxu1 }
 0x2b1   : > { %4385 = vst.msk [vmem:[%s6021_s17 + $0x3b0] sm:$0xff] %vm2133_vm10, %v3892_v5  ;;  %v3890_v26 = vadd.f32 %v6338_v17, %v3824_v56  ;;  %v3835_v48 = vadd.f32 %v4862_v31, %v4828_v16 }
 0x2b2   : > { %v3652_v47 = vpop.f32.mrf.mxu0  ;;  %v3839_v62 = vpop.f32.mrf.mxu1 }
 0x2b3   : > { %4383 = vst.msk [vmem:[%s6021_s17 + $0x3a0] sm:$0xff] %vm2133_vm10, %v3890_v26  ;;  %v3893_v49 = vadd.f32 %v6338_v17, %v3835_v48  ;;  %v3827_v24 = vadd.f32 %v3826_v14, %v3652_v47 }
 0x2b4   : > { %v4831_v15 = vpop.f32.mrf.mxu0  ;;  %v4866_v28 = vpop.f32.mrf.mxu1 }
 0x2b5   : > { %4386 = vst.msk [vmem:[%s6021_s17 + $0x3b8] sm:$0xff] %vm2133_vm10, %v3893_v49  ;;  %v3891_v8 = vadd.f32 %v6338_v17, %v3827_v24  ;;  %v3848_v35 = vadd.f32 %v4865_v2, %v4831_v15 }
 0x2b6   : > { %v3665_v13 = vpop.f32.mrf.mxu0  ;;  %v3842_v18 = vpop.f32.mrf.mxu1 }
 0x2b7   : > { %4384 = vst.msk [vmem:[%s6021_s17 + $0x3a8] sm:$0xff] %vm2133_vm10, %v3891_v8  ;;  %v3896_v43 = vadd.f32 %v6338_v17, %v3848_v35  ;;  %v3840_v34 = vadd.f32 %v3839_v62, %v3665_v13 }
 0x2b8   : > { %v4832_v7 = vpop.f32.mrf.mxu0  ;;  %v4869_v52 = vpop.f32.mrf.mxu1 }
 0x2b9   : > { %4389 = vst.msk [vmem:[%s6021_s17 + $0x3d0] sm:$0xff] %vm2133_vm10, %v3896_v43  ;;  %v3894_v23 = vadd.f32 %v6338_v17, %v3840_v34  ;;  %v3851_v45 = vadd.f32 %v4866_v28, %v4832_v7 }
 0x2ba   : > { %v3668_v3 = vpop.f32.mrf.mxu0  ;;  %v3855_v51 = vpop.f32.mrf.mxu1 }
 0x2bb   : > { %4387 = vst.msk [vmem:[%s6021_s17 + $0x3c0] sm:$0xff] %vm2133_vm10, %v3894_v23  ;;  %v3897_v41 = vadd.f32 %v6338_v17, %v3851_v45  ;;  %v3843_v27 = vadd.f32 %v3842_v18, %v3668_v3 }
 0x2bc   : > { %v4835_v0 = vpop.f32.mrf.mxu0  ;;  %v4870_v10 = vpop.f32.mrf.mxu1 }
 0x2bd   : > { %4390 = vst.msk [vmem:[%s6021_s17 + $0x3d8] sm:$0xff] %vm2133_vm10, %v3897_v41  ;;  %v3895_v36 = vadd.f32 %v6338_v17, %v3843_v27  ;;  %v3864_v40 = vadd.f32 %v4869_v52, %v4835_v0 }
 0x2be   : > { %v3681_v6 = vpop.f32.mrf.mxu0  ;;  %v3858_v1 = vpop.f32.mrf.mxu1 }
 0x2bf   : > { %4388 = vst.msk [vmem:[%s6021_s17 + $0x3c8] sm:$0xff] %vm2133_vm10, %v3895_v36  ;;  %v3900_v37 = vadd.f32 %v6338_v17, %v3864_v40  ;;  %v3856_v46 = vadd.f32 %v3855_v51, %v3681_v6 }
 0x2c0   : > { %v4836_v42 = vpop.f32.mrf.mxu0 }
 0x2c1   : > { %4393 = vst.msk [vmem:[%s6021_s17 + $0x3f0] sm:$0xff] %vm2133_vm10, %v3900_v37  ;;  %v3898_v50 = vadd.f32 %v6338_v17, %v3856_v46  ;;  %v3867_v25 = vadd.f32 %v4870_v10, %v4836_v42 }
 0x2c2   : > { %v3684_v53 = vpop.f32.mrf.mxu0 }
 0x2c3   : > { %4391 = vst.msk [vmem:[%s6021_s17 + $0x3e0] sm:$0xff] %vm2133_vm10, %v3898_v50  ;;  %v3901_v12 = vadd.f32 %v6338_v17, %v3867_v25  ;;  %v3859_v59 = vadd.f32 %v3858_v1, %v3684_v53 }
 0x2c5   : > { %4394 = vst.msk [vmem:[%s6021_s17 + $0x3f8] sm:$0xff] %vm2133_vm10, %v3901_v12  ;;  %v3899_v21 = vadd.f32 %v6338_v17, %v3859_v59 }
 0x2c7   : > { %4392 = vst.msk [vmem:[%s6021_s17 + $0x3e8] sm:$0xff] %vm2133_vm10, %v3899_v21 }
 0x2c8 PF: > { %s13_s12 = sadd.s32 1, %s4967_s12  }
 0x2c9   : > { %p10_p4 = scmp.ge.s32.totalorder %s13_s12, 4  }
 0x2cb   :  { %12 = sbr.rel (!%p10_p4) target bundleno = 1 (0x1), region = 72 }

</bundles_post_ra>
